<compile_context>
chip_gen: v6e
topology: v6e:2x2x1
jax: 0.10.0
libtpu: 0.0.40
codegen_flags: <defaults>
</compile_context>

<pallas_src>
import functools

import numpy as np
import jax
import jax.numpy as jnp
from jax.experimental import pallas as pl
from jax.experimental.pallas import tpu as pltpu

LANE = 128
SUBLANE = 8


def _round_up(x, m):
    return -(-x // m) * m


# --------------------------------------------------------------------------- kernel
def mlp_kernel(w_ref, b_ref, x_ref, o_ref):
    """w_ref: [L,P,P] (compute dtype); b_ref: [L,P,128] f32 (lane-replicated bias);
    x_ref: [P,tb] (compute dtype, batch on lanes); o_ref: [OUT_PAD,tb] f32."""
    num_layers = w_ref.shape[0]
    tb = x_ref.shape[1]
    reps = tb // b_ref.shape[2]

    def bias(l):
        b = b_ref[l]  # [P, 128], already replicated across lanes at pack time
        if reps > 1:
            # [P,128] -> [P,tb]: lane-axis duplication of identical vregs
            # (no cross-lane / XLU broadcast on the serial critical path).
            b = jnp.concatenate([b] * reps, axis=1)
        return b

    h = x_ref[...]  # [P, tb] -- batch on lanes, features on sublanes
    for l in range(num_layers):
        z = jnp.dot(w_ref[l], h, preferred_element_type=jnp.float32) + bias(l)
        if l < num_layers - 1:
            # sigmoid(z) = 0.5*tanh(0.5*z) + 0.5 : one EUP push per vreg
            # (vs ~2 for exp + divide), halving EUP latency in the layer chain.
            h = (0.5 * jnp.tanh(0.5 * z) + 0.5).astype(x_ref.dtype)
        else:
            h = z  # final layer: no activation, keep f32
    o_ref[...] = h[: o_ref.shape[0], :].astype(o_ref.dtype)


# ------------------------------------------------------------------- params / packing
def init_params(key, input_size, hidden_size, output_size):
    """PyTorch nn.Linear-style params: W is [out, in], b is [out]."""
    dims = [
        (input_size, hidden_size // 2),
        (hidden_size // 2, hidden_size),
        (hidden_size, hidden_size),
        (hidden_size, hidden_size // 2),
        (hidden_size // 2, hidden_size // 4),
        (hidden_size // 4, hidden_size // 8),
        (hidden_size // 8, output_size),
    ]
    params = []
    for fan_in, fan_out in dims:
        key, kw, kb = jax.random.split(key, 3)
        bound = 1.0 / float(fan_in) ** 0.5
        w = jax.random.uniform(kw, (fan_out, fan_in), jnp.float32, -bound, bound)
        b = jax.random.uniform(kb, (fan_out,), jnp.float32, -bound, bound)
        params.append((w, b))
    return params


def _padded_feature_dim(params):
    dims = [params[0][0].shape[1]] + [w.shape[0] for (w, _) in params]
    return max(SUBLANE, _round_up(max(dims), SUBLANE))


def pack_params(params, compute_dtype=jnp.float32):
    """One-time, host-side packing into resident slabs (hoisted off the forward path).

    Zero padding is mathematically inert: padded weight columns are zero, so the 0.5
    values the activation produces on padded rows never propagate.
    """
    P = _padded_feature_dim(params)
    L = len(params)
    w_slab = np.zeros((L, P, P), np.float32)
    b_slab = np.zeros((L, P, LANE), np.float32)
    for l, (w, b) in enumerate(params):
        out_f, in_f = w.shape
        w_slab[l, :out_f, :in_f] = np.asarray(w, np.float32)
        b_slab[l, :out_f, :] = np.asarray(b, np.float32)[:, None]  # lane-replicate
    return jnp.asarray(w_slab, compute_dtype), jnp.asarray(b_slab, jnp.float32)


# ------------------------------------------------------------------ device heuristics
def _device_kind():
    try:
        return jax.devices()[0].device_kind.lower()
    except Exception:
        return ""


def _num_tensorcores():
    kind = _device_kind()
    if "v7" in kind:
        return 2
    if ("v4" in kind or "v5p" in kind) and "lite" not in kind:
        return 2  # megacore
    return 1


def _default_compute_dtype():
    kind = _device_kind()
    # bf16 MXU inputs (f32 accumulation) on v6e/v7x; keep f32 on v5e and older.
    if "v6" in kind or "v7" in kind:
        return jnp.bfloat16
    return jnp.float32


def choose_tiling(batch, num_cores, tb_cap=4096):
    """Pick lane tile tb and bucketed batch so grid = num_cores * k with minimal k."""
    b128 = _round_up(max(batch, 1), LANE)
    steps = max(num_cores, -(-b128 // tb_cap))
    steps = _round_up(steps, num_cores)          # keep both v7x TCs load-balanced
    tb = _round_up(-(-b128 // steps), LANE)
    return tb, tb * steps                         # (lane tile, bucketed batch)


# ------------------------------------------------------------------------- forward
@functools.partial(jax.jit, static_argnames=("out_size", "tb"))
def mlp_forward(x, w_slab, b_slab, *, out_size, tb):
    """x: [batch, input_size] (PyTorch layout). Returns [batch, output_size]."""
    assert tb % LANE == 0, "batch (lane) tile must be a multiple of 128"
    B, in_size = x.shape
    L, P, _ = w_slab.shape
    out_pad = max(SUBLANE, _round_up(out_size, SUBLANE))

    grid = max(1, -(-B // tb))
    B_pad = grid * tb
    # Transpose so batch is lane-dense; zero-pad features to P and batch to B_pad.
    xT = jnp.pad(x.T.astype(w_slab.dtype), ((0, P - in_size), (0, B_pad - B)))

    out_t = pl.pallas_call(
        mlp_kernel,
        out_shape=jax.ShapeDtypeStruct((out_pad, B_pad), jnp.float32),
        grid_spec=pltpu.PrefetchScalarGridSpec(
            num_scalar_prefetch=0,
            grid=(grid,),
            in_specs=[
                pl.BlockSpec((L, P, P), lambda i: (0, 0, 0)),     # weight slab (resident)
                pl.BlockSpec((L, P, LANE), lambda i: (0, 0, 0)),  # bias slab (resident)
                pl.BlockSpec((P, tb), lambda i: (0, i)),          # x^T batch tile
            ],
            out_specs=pl.BlockSpec((out_pad, tb), lambda i: (0, i)),
        ),
        compiler_params=pltpu.CompilerParams(
            dimension_semantics=("parallel",),
            # Actual footprint is < ~2.5 MiB even at tb=4096; 32 MiB is safe on every
            # generation (above v5e's 16 MiB default scope, below v7x's 64 MiB physical).
            vmem_limit_bytes=32 * 1024 * 1024,
        ),
    )(w_slab, b_slab, xT)

    # Drop sublane/batch padding and return in PyTorch orientation [batch, out].
    return out_t[:out_size, :B].T


def mlp_reference(x, params):
    h = x
    for l, (w, b) in enumerate(params):
        h = h @ w.T + b
        if l < len(params) - 1:
            h = jax.nn.sigmoid(h)
    return h


# ---------------------------------------------------------------------------- main
if __name__ == "__main__":
    # 4 oscillator params in, 1 value out (matches train_4Osc_torch.py usage).
    input_size, hidden_size, output_size = 4, 32, 1
    batch = 1000  # not a multiple of 128: exercises bucketing + padding

    key = jax.random.PRNGKey(0)
    key, kx = jax.random.split(key)
    x = jax.random.normal(kx, (batch, input_size), jnp.float32)
    params = init_params(key, input_size, hidden_size, output_size)

    compute_dtype = _default_compute_dtype()
    # One-time packing, hoisted off the per-call forward path.
    w_slab, b_slab = pack_params(params, compute_dtype)

    # tb derived from batch + core count: grid=1 on v5e/v6e, grid=2 on v7x/megacore.
    tb, b_bucket = choose_tiling(batch, _num_tensorcores())
    # Bucket the batch at the call site so nearby batch sizes reuse the same executable.
    xb = jnp.pad(x, ((0, b_bucket - batch), (0, 0)))

    out = mlp_forward(xb, w_slab, b_slab, out_size=output_size, tb=tb)[:batch]
    out = jax.block_until_ready(out)

    ref = mlp_reference(x, params)
    assert out.shape == (batch, output_size)
    err = float(jnp.max(jnp.abs(out - ref)))
    # bf16 MXU inputs on v6e/v7x need a looser tolerance than pure f32.
    tol = 3e-5 if np.dtype(compute_dtype) == np.dtype(np.float32) else 2e-2
    assert jnp.allclose(out, ref, atol=tol, rtol=tol), f"mismatch: max abs err {err}"

    print("KERNEL_OK")
</pallas_src>

<mosaic_0001>
module attributes {stable_mosaic.version = 11 : i64} {
  func.func @mlp_kernel(%arg0: i32, %arg1: memref<7x32x32xf32, #tpu.memory_space<vmem>>, %arg2: memref<7x32x128xf32, #tpu.memory_space<vmem>>, %arg3: memref<32x1024xf32, #tpu.memory_space<vmem>>, %arg4: memref<8x1024xf32, #tpu.memory_space<vmem>>) attributes {dimension_semantics = [#tpu.dimension_semantics<parallel>], iteration_bounds = array<i64: 1>, scalar_prefetch = 0 : i64, scratch_operands = 0 : i64, tpu.core_type = #tpu.core_type<tc>, window_params = [{pipeline_mode = #tpu.pipeline_mode<synchronous>, transform_indices = @transform_0, window_bounds = array<i64: 7, 32, 32>}, {pipeline_mode = #tpu.pipeline_mode<synchronous>, transform_indices = @transform_1, window_bounds = array<i64: 7, 32, 128>}, {transform_indices = @transform_2, window_bounds = array<i64: 32, 1024>}, {transform_indices = @transform_3, window_bounds = array<i64: 8, 1024>}]} {
    %c0 = arith.constant 0 : index
    %c0_0 = arith.constant 0 : index
    %0 = vector.load %arg3[%c0, %c0_0] : memref<32x1024xf32, #tpu.memory_space<vmem>>, vector<32x1024xf32>
    %c0_1 = arith.constant 0 : index
    %c0_2 = arith.constant 0 : index
    %c0_3 = arith.constant 0 : index
    %1 = vector.load %arg1[%c0_1, %c0_2, %c0_3] : memref<7x32x32xf32, #tpu.memory_space<vmem>>, vector<1x32x32xf32>
    %2 = vector.shape_cast %1 : vector<1x32x32xf32> to vector<32x32xf32>
    %cst = arith.constant dense<0.000000e+00> : vector<32x1024xf32>
    %3 = tpu.matmul %2, %0, %cst {dimension_numbers = #tpu.dot_dimension_numbers<[1], [0], [0], [1], [0, 0, 1, 1], [], []>} : vector<32x32xf32>, vector<32x1024xf32>, vector<32x1024xf32> -> vector<32x1024xf32>
    %c0_4 = arith.constant 0 : index
    %c0_5 = arith.constant 0 : index
    %c0_6 = arith.constant 0 : index
    %4 = vector.load %arg2[%c0_4, %c0_5, %c0_6] : memref<7x32x128xf32, #tpu.memory_space<vmem>>, vector<1x32x128xf32>
    %5 = vector.shape_cast %4 : vector<1x32x128xf32> to vector<32x128xf32>
    %6 = tpu.concatenate %5, %5, %5, %5, %5, %5, %5, %5 in 1 : vector<32x128xf32>, vector<32x128xf32>, vector<32x128xf32>, vector<32x128xf32>, vector<32x128xf32>, vector<32x128xf32>, vector<32x128xf32>, vector<32x128xf32> -> vector<32x1024xf32>
    %7 = arith.addf %3, %6 : vector<32x1024xf32>
    %cst_7 = arith.constant 5.000000e-01 : f32
    %8 = vector.broadcast %cst_7 : f32 to vector<32x1024xf32>
    %9 = arith.mulf %8, %7 : vector<32x1024xf32>
    %10 = math.tanh %9 : vector<32x1024xf32>
    %cst_8 = arith.constant 5.000000e-01 : f32
    %11 = vector.broadcast %cst_8 : f32 to vector<32x1024xf32>
    %12 = arith.mulf %11, %10 : vector<32x1024xf32>
    %cst_9 = arith.constant 5.000000e-01 : f32
    %13 = vector.broadcast %cst_9 : f32 to vector<32x1024xf32>
    %14 = arith.addf %12, %13 : vector<32x1024xf32>
    %c1 = arith.constant 1 : index
    %c0_10 = arith.constant 0 : index
    %c0_11 = arith.constant 0 : index
    %15 = vector.load %arg1[%c1, %c0_10, %c0_11] : memref<7x32x32xf32, #tpu.memory_space<vmem>>, vector<1x32x32xf32>
    %16 = vector.shape_cast %15 : vector<1x32x32xf32> to vector<32x32xf32>
    %cst_12 = arith.constant dense<0.000000e+00> : vector<32x1024xf32>
    %17 = tpu.matmul %16, %14, %cst_12 {dimension_numbers = #tpu.dot_dimension_numbers<[1], [0], [0], [1], [0, 0, 1, 1], [], []>} : vector<32x32xf32>, vector<32x1024xf32>, vector<32x1024xf32> -> vector<32x1024xf32>
    %c1_13 = arith.constant 1 : index
    %c0_14 = arith.constant 0 : index
    %c0_15 = arith.constant 0 : index
    %18 = vector.load %arg2[%c1_13, %c0_14, %c0_15] : memref<7x32x128xf32, #tpu.memory_space<vmem>>, vector<1x32x128xf32>
    %19 = vector.shape_cast %18 : vector<1x32x128xf32> to vector<32x128xf32>
    %20 = tpu.concatenate %19, %19, %19, %19, %19, %19, %19, %19 in 1 : vector<32x128xf32>, vector<32x128xf32>, vector<32x128xf32>, vector<32x128xf32>, vector<32x128xf32>, vector<32x128xf32>, vector<32x128xf32>, vector<32x128xf32> -> vector<32x1024xf32>
    %21 = arith.addf %17, %20 : vector<32x1024xf32>
    %cst_16 = arith.constant 5.000000e-01 : f32
    %22 = vector.broadcast %cst_16 : f32 to vector<32x1024xf32>
    %23 = arith.mulf %22, %21 : vector<32x1024xf32>
    %24 = math.tanh %23 : vector<32x1024xf32>
    %cst_17 = arith.constant 5.000000e-01 : f32
    %25 = vector.broadcast %cst_17 : f32 to vector<32x1024xf32>
    %26 = arith.mulf %25, %24 : vector<32x1024xf32>
    %cst_18 = arith.constant 5.000000e-01 : f32
    %27 = vector.broadcast %cst_18 : f32 to vector<32x1024xf32>
    %28 = arith.addf %26, %27 : vector<32x1024xf32>
    %c2 = arith.constant 2 : index
    %c0_19 = arith.constant 0 : index
    %c0_20 = arith.constant 0 : index
    %29 = vector.load %arg1[%c2, %c0_19, %c0_20] : memref<7x32x32xf32, #tpu.memory_space<vmem>>, vector<1x32x32xf32>
    %30 = vector.shape_cast %29 : vector<1x32x32xf32> to vector<32x32xf32>
    %cst_21 = arith.constant dense<0.000000e+00> : vector<32x1024xf32>
    %31 = tpu.matmul %30, %28, %cst_21 {dimension_numbers = #tpu.dot_dimension_numbers<[1], [0], [0], [1], [0, 0, 1, 1], [], []>} : vector<32x32xf32>, vector<32x1024xf32>, vector<32x1024xf32> -> vector<32x1024xf32>
    %c2_22 = arith.constant 2 : index
    %c0_23 = arith.constant 0 : index
    %c0_24 = arith.constant 0 : index
    %32 = vector.load %arg2[%c2_22, %c0_23, %c0_24] : memref<7x32x128xf32, #tpu.memory_space<vmem>>, vector<1x32x128xf32>
    %33 = vector.shape_cast %32 : vector<1x32x128xf32> to vector<32x128xf32>
    %34 = tpu.concatenate %33, %33, %33, %33, %33, %33, %33, %33 in 1 : vector<32x128xf32>, vector<32x128xf32>, vector<32x128xf32>, vector<32x128xf32>, vector<32x128xf32>, vector<32x128xf32>, vector<32x128xf32>, vector<32x128xf32> -> vector<32x1024xf32>
    %35 = arith.addf %31, %34 : vector<32x1024xf32>
    %cst_25 = arith.constant 5.000000e-01 : f32
    %36 = vector.broadcast %cst_25 : f32 to vector<32x1024xf32>
    %37 = arith.mulf %36, %35 : vector<32x1024xf32>
    %38 = math.tanh %37 : vector<32x1024xf32>
    %cst_26 = arith.constant 5.000000e-01 : f32
    %39 = vector.broadcast %cst_26 : f32 to vector<32x1024xf32>
    %40 = arith.mulf %39, %38 : vector<32x1024xf32>
    %cst_27 = arith.constant 5.000000e-01 : f32
    %41 = vector.broadcast %cst_27 : f32 to vector<32x1024xf32>
    %42 = arith.addf %40, %41 : vector<32x1024xf32>
    %c3 = arith.constant 3 : index
    %c0_28 = arith.constant 0 : index
    %c0_29 = arith.constant 0 : index
    %43 = vector.load %arg1[%c3, %c0_28, %c0_29] : memref<7x32x32xf32, #tpu.memory_space<vmem>>, vector<1x32x32xf32>
    %44 = vector.shape_cast %43 : vector<1x32x32xf32> to vector<32x32xf32>
    %cst_30 = arith.constant dense<0.000000e+00> : vector<32x1024xf32>
    %45 = tpu.matmul %44, %42, %cst_30 {dimension_numbers = #tpu.dot_dimension_numbers<[1], [0], [0], [1], [0, 0, 1, 1], [], []>} : vector<32x32xf32>, vector<32x1024xf32>, vector<32x1024xf32> -> vector<32x1024xf32>
    %c3_31 = arith.constant 3 : index
    %c0_32 = arith.constant 0 : index
    %c0_33 = arith.constant 0 : index
    %46 = vector.load %arg2[%c3_31, %c0_32, %c0_33] : memref<7x32x128xf32, #tpu.memory_space<vmem>>, vector<1x32x128xf32>
    %47 = vector.shape_cast %46 : vector<1x32x128xf32> to vector<32x128xf32>
    %48 = tpu.concatenate %47, %47, %47, %47, %47, %47, %47, %47 in 1 : vector<32x128xf32>, vector<32x128xf32>, vector<32x128xf32>, vector<32x128xf32>, vector<32x128xf32>, vector<32x128xf32>, vector<32x128xf32>, vector<32x128xf32> -> vector<32x1024xf32>
    %49 = arith.addf %45, %48 : vector<32x1024xf32>
    %cst_34 = arith.constant 5.000000e-01 : f32
    %50 = vector.broadcast %cst_34 : f32 to vector<32x1024xf32>
    %51 = arith.mulf %50, %49 : vector<32x1024xf32>
    %52 = math.tanh %51 : vector<32x1024xf32>
    %cst_35 = arith.constant 5.000000e-01 : f32
    %53 = vector.broadcast %cst_35 : f32 to vector<32x1024xf32>
    %54 = arith.mulf %53, %52 : vector<32x1024xf32>
    %cst_36 = arith.constant 5.000000e-01 : f32
    %55 = vector.broadcast %cst_36 : f32 to vector<32x1024xf32>
    %56 = arith.addf %54, %55 : vector<32x1024xf32>
    %c4 = arith.constant 4 : index
    %c0_37 = arith.constant 0 : index
    %c0_38 = arith.constant 0 : index
    %57 = vector.load %arg1[%c4, %c0_37, %c0_38] : memref<7x32x32xf32, #tpu.memory_space<vmem>>, vector<1x32x32xf32>
    %58 = vector.shape_cast %57 : vector<1x32x32xf32> to vector<32x32xf32>
    %cst_39 = arith.constant dense<0.000000e+00> : vector<32x1024xf32>
    %59 = tpu.matmul %58, %56, %cst_39 {dimension_numbers = #tpu.dot_dimension_numbers<[1], [0], [0], [1], [0, 0, 1, 1], [], []>} : vector<32x32xf32>, vector<32x1024xf32>, vector<32x1024xf32> -> vector<32x1024xf32>
    %c4_40 = arith.constant 4 : index
    %c0_41 = arith.constant 0 : index
    %c0_42 = arith.constant 0 : index
    %60 = vector.load %arg2[%c4_40, %c0_41, %c0_42] : memref<7x32x128xf32, #tpu.memory_space<vmem>>, vector<1x32x128xf32>
    %61 = vector.shape_cast %60 : vector<1x32x128xf32> to vector<32x128xf32>
    %62 = tpu.concatenate %61, %61, %61, %61, %61, %61, %61, %61 in 1 : vector<32x128xf32>, vector<32x128xf32>, vector<32x128xf32>, vector<32x128xf32>, vector<32x128xf32>, vector<32x128xf32>, vector<32x128xf32>, vector<32x128xf32> -> vector<32x1024xf32>
    %63 = arith.addf %59, %62 : vector<32x1024xf32>
    %cst_43 = arith.constant 5.000000e-01 : f32
    %64 = vector.broadcast %cst_43 : f32 to vector<32x1024xf32>
    %65 = arith.mulf %64, %63 : vector<32x1024xf32>
    %66 = math.tanh %65 : vector<32x1024xf32>
    %cst_44 = arith.constant 5.000000e-01 : f32
    %67 = vector.broadcast %cst_44 : f32 to vector<32x1024xf32>
    %68 = arith.mulf %67, %66 : vector<32x1024xf32>
    %cst_45 = arith.constant 5.000000e-01 : f32
    %69 = vector.broadcast %cst_45 : f32 to vector<32x1024xf32>
    %70 = arith.addf %68, %69 : vector<32x1024xf32>
    %c5 = arith.constant 5 : index
    %c0_46 = arith.constant 0 : index
    %c0_47 = arith.constant 0 : index
    %71 = vector.load %arg1[%c5, %c0_46, %c0_47] : memref<7x32x32xf32, #tpu.memory_space<vmem>>, vector<1x32x32xf32>
    %72 = vector.shape_cast %71 : vector<1x32x32xf32> to vector<32x32xf32>
    %cst_48 = arith.constant dense<0.000000e+00> : vector<32x1024xf32>
    %73 = tpu.matmul %72, %70, %cst_48 {dimension_numbers = #tpu.dot_dimension_numbers<[1], [0], [0], [1], [0, 0, 1, 1], [], []>} : vector<32x32xf32>, vector<32x1024xf32>, vector<32x1024xf32> -> vector<32x1024xf32>
    %c5_49 = arith.constant 5 : index
    %c0_50 = arith.constant 0 : index
    %c0_51 = arith.constant 0 : index
    %74 = vector.load %arg2[%c5_49, %c0_50, %c0_51] : memref<7x32x128xf32, #tpu.memory_space<vmem>>, vector<1x32x128xf32>
    %75 = vector.shape_cast %74 : vector<1x32x128xf32> to vector<32x128xf32>
    %76 = tpu.concatenate %75, %75, %75, %75, %75, %75, %75, %75 in 1 : vector<32x128xf32>, vector<32x128xf32>, vector<32x128xf32>, vector<32x128xf32>, vector<32x128xf32>, vector<32x128xf32>, vector<32x128xf32>, vector<32x128xf32> -> vector<32x1024xf32>
    %77 = arith.addf %73, %76 : vector<32x1024xf32>
    %cst_52 = arith.constant 5.000000e-01 : f32
    %78 = vector.broadcast %cst_52 : f32 to vector<32x1024xf32>
    %79 = arith.mulf %78, %77 : vector<32x1024xf32>
    %80 = math.tanh %79 : vector<32x1024xf32>
    %cst_53 = arith.constant 5.000000e-01 : f32
    %81 = vector.broadcast %cst_53 : f32 to vector<32x1024xf32>
    %82 = arith.mulf %81, %80 : vector<32x1024xf32>
    %cst_54 = arith.constant 5.000000e-01 : f32
    %83 = vector.broadcast %cst_54 : f32 to vector<32x1024xf32>
    %84 = arith.addf %82, %83 : vector<32x1024xf32>
    %c6 = arith.constant 6 : index
    %c0_55 = arith.constant 0 : index
    %c0_56 = arith.constant 0 : index
    %85 = vector.load %arg1[%c6, %c0_55, %c0_56] : memref<7x32x32xf32, #tpu.memory_space<vmem>>, vector<1x32x32xf32>
    %86 = vector.shape_cast %85 : vector<1x32x32xf32> to vector<32x32xf32>
    %cst_57 = arith.constant dense<0.000000e+00> : vector<32x1024xf32>
    %87 = tpu.matmul %86, %84, %cst_57 {dimension_numbers = #tpu.dot_dimension_numbers<[1], [0], [0], [1], [0, 0, 1, 1], [], []>} : vector<32x32xf32>, vector<32x1024xf32>, vector<32x1024xf32> -> vector<32x1024xf32>
    %c6_58 = arith.constant 6 : index
    %c0_59 = arith.constant 0 : index
    %c0_60 = arith.constant 0 : index
    %88 = vector.load %arg2[%c6_58, %c0_59, %c0_60] : memref<7x32x128xf32, #tpu.memory_space<vmem>>, vector<1x32x128xf32>
    %89 = vector.shape_cast %88 : vector<1x32x128xf32> to vector<32x128xf32>
    %90 = tpu.concatenate %89, %89, %89, %89, %89, %89, %89, %89 in 1 : vector<32x128xf32>, vector<32x128xf32>, vector<32x128xf32>, vector<32x128xf32>, vector<32x128xf32>, vector<32x128xf32>, vector<32x128xf32>, vector<32x128xf32> -> vector<32x1024xf32>
    %91 = arith.addf %87, %90 : vector<32x1024xf32>
    %92 = vector.extract_strided_slice %91 {offsets = [0, 0], sizes = [8, 1024], strides = [1, 1]} : vector<32x1024xf32> to vector<8x1024xf32>
    %c0_61 = arith.constant 0 : index
    %c0_62 = arith.constant 0 : index
    %93 = vector.load %arg4[%c0_61, %c0_62] : memref<8x1024xf32, #tpu.memory_space<vmem>>, vector<8x1024xf32>
    tpu.vector_store %arg4[%c0_61, %c0_62], %92 {strides = array<i32>} : memref<8x1024xf32, #tpu.memory_space<vmem>>, vector<8x1024xf32>,
    return
  }
  func.func @transform_0(%arg0: i32) -> (i32, i32, i32) {
    %c0_i32 = arith.constant 0 : i32
    %c0_i32_0 = arith.constant 0 : i32
    %c0_i32_1 = arith.constant 0 : i32
    %c0_i32_2 = arith.constant 0 : i32
    return %c0_i32, %c0_i32_0, %c0_i32_1 : i32, i32, i32
  }
  func.func @transform_1(%arg0: i32) -> (i32, i32, i32) {
    %c0_i32 = arith.constant 0 : i32
    %c0_i32_0 = arith.constant 0 : i32
    %c0_i32_1 = arith.constant 0 : i32
    %c0_i32_2 = arith.constant 0 : i32
    return %c0_i32, %c0_i32_0, %c0_i32_1 : i32, i32, i32
  }
  func.func @transform_2(%arg0: i32) -> (i32, i32) {
    %c0_i32 = arith.constant 0 : i32
    %c0_i32_0 = arith.constant 0 : i32
    return %c0_i32, %arg0 : i32, i32
  }
  func.func @transform_3(%arg0: i32) -> (i32, i32) {
    %c0_i32 = arith.constant 0 : i32
    %c0_i32_0 = arith.constant 0 : i32
    return %c0_i32, %arg0 : i32, i32
  }
}

</mosaic_0001>

<bundles_post_ra>
// kernel: mlp_forward.1
= control target key start
LH: loop header
LB: loop body
LE: loop exit
PB: predicated region body
PF: predicated region fallthrough
CT: control target
= control target key end

     0   :  { %8 = vsyncpa [#allocation3], 0  ;;  %s4005_s12 = smov [#allocation2]   ;;  %s4985_s0 = inlined_call_operand.vmem [shape: f32[7,32,32], index: 0, kind: input, shape index: {}]   ;;  %s4986_s1 = inlined_call_operand.hbm [shape: f32[7,32,128], index: 1, kind: input, shape index: {}]   ;;  %s4987_s2 = inlined_call_operand.vmem [shape: f32[32,1024], index: 2, kind: input, shape index: {}]   ;;  %s4988_s3 = inlined_call_operand.vmem [shape: f32[8,1024], index: 3, kind: output, shape index: {}]  }
   0x1   :  { %s16_s13 = sshll.u32 %s4005_s12, 4  ;;  %s17_s13 = int_to_ptr.vmem [resolvable:$true] %s16_s13 }
   0x2   :  { %s3991_s14 = scalar_lea.vmem %s17_s13, 3584  ;;  %p3996_p1 = scmp.lt.s32.totalorder %s17_s13, %s17_s13 }
   0x3   :  { %p3992_p0 = scmp.ne.s32.totalorder %s17_s13, %s3991_s14  ;;  %p3997_p2 = scmp.lt.s32.totalorder %s3991_s14, %s3991_s14 }
   0x5   :  { %p3998_p3 = por %p3997_p2, %p3996_p1 }
   0x7   :  { %p3999_p4 = pnand %p3998_p3, %p3992_p0 }
   0x9   :  { %4002 = shalt.err (!%p3999_p4)
}
   0xa   :  { %s4006_s15 = smov 128   ;;  %s4007_s16 = smov 8  }
   0xb   :  { %22 = dma.hbm_to_vmem [thread:$0]  %s4986_s1, 3584, %s17_s13, [#allocation3], %s4006_s15, %s4006_s15, %s4007_s16  }
   0xc   :  { %4003 = dma.done.wait [#allocation3], 3584  }
   0xd   :  { %4004 = vsyncadd [#allocation3], 4294963712  ;;  %v4008_v0 = vmov 0.0   ;;  %v53_v1 = vld [vmem:[%s4987_s2 + $0xc8] sm:$0xff]  ;;  %v55_v2 = vld [vmem:[%s4987_s2 + $0xd8] sm:$0xff]  ;;  %vm68_vm0 = vcmask 261120  }
   0xe   :  { %145 = vmatprep.mubr.f32.mxu0 %v4008_v0  ;;  %234 = vmatprep.mubr.f32.mxu1 %v4008_v0  ;;  %v52_v3 = vld [vmem:[%s4987_s2 + $0xc0] sm:$0xff]  ;;  %v54_v4 = vld [vmem:[%s4987_s2 + $0xd0] sm:$0xff]  ;;  %v45_v5 = vld [vmem:[%s4987_s2 + $0x88] sm:$0xff] }
   0xf   :  { %105 = vmatprep.subr.mxu0 %v53_v1  ;;  %194 = vmatprep.subr.mxu1 %v55_v2  ;;  %v47_v6 = vld [vmem:[%s4987_s2 + $0x98] sm:$0xff]  ;;  %v44_v7 = vld [vmem:[%s4987_s2 + $0x80] sm:$0xff]  ;;  %v46_v8 = vld [vmem:[%s4987_s2 + $0x90] sm:$0xff] }
  0x10   :  { %106 = vmatpush1.msra.mxu0 %v52_v3  ;;  %195 = vmatpush1.msra.mxu1 %v54_v4  ;;  %v37_v9 = vld [vmem:[%s4987_s2 + $0x48] sm:$0xff]  ;;  %v39_v10 = vld [vmem:[%s4987_s2 + $0x58] sm:$0xff]  ;;  %v36_v11 = vld [vmem:[%s4987_s2 + $0x40] sm:$0xff] }
  0x11   :  { %107 = vmatprep.subr.mxu0 %v45_v5  ;;  %196 = vmatprep.subr.mxu1 %v47_v6  ;;  %v38_v12 = vld [vmem:[%s4987_s2 + $0x50] sm:$0xff]  ;;  %v29_v13 = vld [vmem:[%s4987_s2 + $0x8] sm:$0xff]  ;;  %v31_v14 = vld [vmem:[%s4987_s2 + $0x18] sm:$0xff] }
  0x12   :  { %108 = vmatpush1.msra.mxu0 %v44_v7  ;;  %197 = vmatpush1.msra.mxu1 %v46_v8  ;;  %v28_v15 = vld [vmem:[%s4987_s2] sm:$0xff]  ;;  %v30_v16 = vld [vmem:[%s4987_s2 + $0x10] sm:$0xff]  ;;  %v57_v18 = vld [vmem:[%s4987_s2 + $0xe8] sm:$0xff] }
  0x13   :  { %109 = vmatprep.subr.mxu0 %v37_v9  ;;  %198 = vmatprep.subr.mxu1 %v39_v10  ;;  %v60_v17 = vld [vmem:[%s4985_s0] sm:$0xff]  ;;  %v59_v19 = vld [vmem:[%s4987_s2 + $0xf8] sm:$0xff]  ;;  %v58_v21 = vld [vmem:[%s4987_s2 + $0xf0] sm:$0xff] }
  0x14   :  { %110 = vmatpush1.msra.mxu0 %v36_v11  ;;  %199 = vmatpush1.msra.mxu1 %v38_v12  ;;  %v56_v20 = vld [vmem:[%s4987_s2 + $0xe0] sm:$0xff]  ;;  %v61_v22 = vld [vmem:[%s4985_s0 + $0x8] sm:$0xff]  ;;  %v51_v24 = vld [vmem:[%s4987_s2 + $0xb8] sm:$0xff] }
  0x15   :  { %111 = vmatprep.subr.mxu0 %v29_v13  ;;  %200 = vmatprep.subr.mxu1 %v31_v14  ;;  %v49_v23 = vld [vmem:[%s4987_s2 + $0xa8] sm:$0xff]  ;;  %v48_v25 = vld [vmem:[%s4987_s2 + $0xa0] sm:$0xff]  ;;  %v50_v26 = vld [vmem:[%s4987_s2 + $0xb0] sm:$0xff] }
  0x16   :  { %112 = vmatpush1.msra.mxu0 %v28_v15  ;;  %201 = vmatpush1.msra.mxu1 %v30_v16  ;;  %v62_v27 = vld [vmem:[%s4985_s0 + $0x10] sm:$0xff]  ;;  %v41_v28 = vld [vmem:[%s4987_s2 + $0x68] sm:$0xff]  ;;  %v43_v29 = vld [vmem:[%s4987_s2 + $0x78] sm:$0xff] }
  0x17   :  { %3459 = vmatmul.mubr.msk.f32.vlgmr.msra.gmra.mxu0 %vm68_vm0, %v60_v17  ;;  %3463 = vmatmul.mubr.msk.f32.vlgmr.msra.gmra.mxu1 %vm68_vm0, %v60_v17  ;;  %v40_v30 = vld [vmem:[%s4987_s2 + $0x60] sm:$0xff]  ;;  %v42_v31 = vld [vmem:[%s4987_s2 + $0x70] sm:$0xff]  ;;  %v63_v32 = vld [vmem:[%s4985_s0 + $0x18] sm:$0xff] }
  0x18   :  { %151 = vmatprep.mubr.f32.mxu0 %v4008_v0  ;;  %240 = vmatprep.mubr.f32.mxu1 %v4008_v0  ;;  %v33_v33 = vld [vmem:[%s4987_s2 + $0x28] sm:$0xff]  ;;  %v35_v34 = vld [vmem:[%s4987_s2 + $0x38] sm:$0xff]  ;;  %v32_v35 = vld [vmem:[%s4987_s2 + $0x20] sm:$0xff] }
  0x19   :  { %283 = vmatprep.subr.mxu0 %v57_v18  ;;  %372 = vmatprep.subr.mxu1 %v59_v19  ;;  %v34_v36 = vld [vmem:[%s4987_s2 + $0x30] sm:$0xff]  ;;  %v4174_v37 = vld [vmem:[#allocation2] sm:$0xff]  ;;  %v4177_v43 = vld [vmem:[#allocation2 + $0x8] sm:$0xff] }
  0x1a   :  { %284 = vmatpush1.msra.mxu0 %v56_v20  ;;  %373 = vmatpush1.msra.mxu1 %v58_v21  ;;  %v4182_v53 = vld [vmem:[#allocation2 + $0x10] sm:$0xff]  ;;  %v4187_v1 = vld [vmem:[#allocation2 + $0x18] sm:$0xff] }
  0x1b   :  { %3460 = vmatmul.mubr.msk.f32.gmra.mxu0 %vm68_vm0, %v61_v22  ;;  %3464 = vmatmul.mubr.msk.f32.gmra.mxu1 %vm68_vm0, %v61_v22 }
  0x1c   :  { %157 = vmatprep.mubr.f32.mxu0 %v4008_v0  ;;  %246 = vmatprep.mubr.f32.mxu1 %v4008_v0 }
  0x1d   :  { %285 = vmatprep.subr.mxu0 %v49_v23  ;;  %374 = vmatprep.subr.mxu1 %v51_v24 }
  0x1e   :  { %286 = vmatpush1.msra.mxu0 %v48_v25  ;;  %375 = vmatpush1.msra.mxu1 %v50_v26 }
  0x1f   :  { %3461 = vmatmul.mubr.msk.f32.gmra.mxu0 %vm68_vm0, %v62_v27  ;;  %3465 = vmatmul.mubr.msk.f32.gmra.mxu1 %vm68_vm0, %v62_v27 }
  0x20   :  { %163 = vmatprep.mubr.f32.mxu0 %v4008_v0  ;;  %252 = vmatprep.mubr.f32.mxu1 %v4008_v0 }
  0x21   :  { %287 = vmatprep.subr.mxu0 %v41_v28  ;;  %376 = vmatprep.subr.mxu1 %v43_v29 }
  0x22   :  { %288 = vmatpush1.msra.mxu0 %v40_v30  ;;  %377 = vmatpush1.msra.mxu1 %v42_v31 }
  0x23   :  { %3462 = vmatmul.mubr.msk.f32.gmra.mxu0 %vm68_vm0, %v63_v32  ;;  %3466 = vmatmul.mubr.msk.f32.gmra.mxu1 %vm68_vm0, %v63_v32 }
  0x24   :  { %289 = vmatprep.subr.mxu0 %v33_v33  ;;  %378 = vmatprep.subr.mxu1 %v35_v34 }
  0x25   :  { %290 = vmatpush1.msra.mxu0 %v32_v35  ;;  %323 = vmatprep.mubr.f32.mxu0 %v4008_v0 }
  0x26   :  { %379 = vmatpush1.msra.mxu1 %v34_v36  ;;  %412 = vmatprep.mubr.f32.mxu1 %v4008_v0 }
  0x27   :  { %3467 = vmatmul.mubr.msk.f32.vlgmr.msra.gmra.mxu0 %vm68_vm0, %v60_v17  ;;  %3471 = vmatmul.mubr.msk.f32.vlgmr.msra.gmra.mxu1 %vm68_vm0, %v60_v17 }
  0x28   :  { %329 = vmatprep.mubr.f32.mxu0 %v4008_v0  ;;  %418 = vmatprep.mubr.f32.mxu1 %v4008_v0 }
  0x2b   :  { %3468 = vmatmul.mubr.msk.f32.gmra.mxu0 %vm68_vm0, %v61_v22  ;;  %3472 = vmatmul.mubr.msk.f32.gmra.mxu1 %vm68_vm0, %v61_v22 }
  0x2c   :  { %335 = vmatprep.mubr.f32.mxu0 %v4008_v0  ;;  %424 = vmatprep.mubr.f32.mxu1 %v4008_v0 }
  0x2f   :  { %3469 = vmatmul.mubr.msk.f32.gmra.mxu0 %vm68_vm0, %v62_v27  ;;  %3473 = vmatmul.mubr.msk.f32.gmra.mxu1 %vm68_vm0, %v62_v27 }
  0x30   :  { %341 = vmatprep.mubr.f32.mxu0 %v4008_v0  ;;  %430 = vmatprep.mubr.f32.mxu1 %v4008_v0 }
  0x33   :  { %3470 = vmatmul.mubr.msk.f32.gmra.mxu0 %vm68_vm0, %v63_v32  ;;  %3474 = vmatmul.mubr.msk.f32.gmra.mxu1 %vm68_vm0, %v63_v32 }
  0x34   :  { %651 = vmatprep.mubr.f32.mxu0 %v4008_v0  ;;  %740 = vmatprep.mubr.f32.mxu1 %v4008_v0 }
  0xd7   :  { %v147_v38 = vpop.f32.mrf.mxu0  ;;  %v236_v39 = vpop.f32.mrf.mxu1 }
  0xd8   :  { %v148_v40 = vadd.f32 %v147_v38, %v4174_v37  ;;  %v237_v12 = vadd.f32 %v236_v39, %v4174_v37 }
  0xd9   :  { %v149_v41 = vpop.f32.mrf.mxu0  ;;  %v238_v42 = vpop.f32.mrf.mxu1 }
  0xda   :  { %v150_v44 = vadd.f32 %v149_v41, %v4174_v37  ;;  %v437_v45 = vmul.f32 0.5, %v148_v40  ;;  %v239_v13 = vadd.f32 %v238_v42, %v4174_v37  ;;  %v439_v29 = vmul.f32 0.5, %v237_v12 }
  0xdb   :  { %v153_v46 = vpop.f32.mrf.mxu0  ;;  %v242_v47 = vpop.f32.mrf.mxu1 }
  0xdc   :  { %v438_v48 = vmul.f32 0.5, %v150_v44  ;;  %v154_v49 = vadd.f32 %v153_v46, %v4177_v43  ;;  %v243_v50 = vadd.f32 %v242_v47, %v4177_v43  ;;  %3599 = vtanh.f32 %v437_v45 }
  0xdd   :  { %v155_v51 = vpop.f32.mrf.mxu0  ;;  %v244_v52 = vpop.f32.mrf.mxu1  ;;  %v440_v26 = vmul.f32 0.5, %v239_v13 }
  0xde   :  { %v445_v54 = vmul.f32 0.5, %v154_v49  ;;  %v156_v55 = vadd.f32 %v155_v51, %v4177_v43  ;;  %v447_v56 = vmul.f32 0.5, %v243_v50  ;;  %3601 = vtanh.f32 %v438_v48 }
  0xdf   :  { %v159_v57 = vpop.f32.mrf.mxu0  ;;  %v248_v58 = vpop.f32.mrf.mxu1  ;;  %v245_v5 = vadd.f32 %v244_v52, %v4177_v43 }
  0xe0   :  { %v446_v59 = vmul.f32 0.5, %v156_v55  ;;  %v160_v60 = vadd.f32 %v159_v57, %v4182_v53  ;;  %3603 = vtanh.f32 %v445_v54  ;;  %v249_v61 = vadd.f32 %v248_v58, %v4182_v53 }
  0xe1   :  { %v161_v62 = vpop.f32.mrf.mxu0  ;;  %v250_v63 = vpop.f32.mrf.mxu1  ;;  %3605 = vtanh.f32 %v447_v56  ;;  %v448_v23 = vmul.f32 0.5, %v245_v5 }
  0xe2   :  { %v453_v2 = vmul.f32 0.5, %v160_v60  ;;  %v162_v3 = vadd.f32 %v161_v62, %v4182_v53  ;;  %v251_v4 = vadd.f32 %v250_v63, %v4182_v53  ;;  %3607 = vtanh.f32 %v446_v59 }
  0xe3   :  { %v455_v6 = vmul.f32 0.5, %v249_v61  ;;  %v165_v7 = vpop.f32.mrf.mxu0  ;;  %v254_v8 = vpop.f32.mrf.mxu1 }
  0xe4   :  { %3609 = vtanh.f32 %v453_v2  ;;  %v454_v9 = vmul.f32 0.5, %v162_v3  ;;  %v456_v10 = vmul.f32 0.5, %v251_v4  ;;  %v166_v11 = vadd.f32 %v165_v7, %v4187_v1 }
  0xe5   :  { %3611 = vtanh.f32 %v455_v6  ;;  %v255_v14 = vadd.f32 %v254_v8, %v4187_v1  ;;  %v167_v15 = vpop.f32.mrf.mxu0  ;;  %v256_v16 = vpop.f32.mrf.mxu1 }
  0xe6   :  { %3613 = vtanh.f32 %v454_v9  ;;  %v461_v17 = vmul.f32 0.5, %v166_v11  ;;  %v168_v18 = vadd.f32 %v167_v15, %v4187_v1  ;;  %v257_v19 = vadd.f32 %v256_v16, %v4187_v1 }
  0xe7   :  { %3615 = vtanh.f32 %v456_v10  ;;  %v463_v20 = vmul.f32 0.5, %v255_v14  ;;  %v325_v21 = vpop.f32.mrf.mxu0  ;;  %v414_v22 = vpop.f32.mrf.mxu1 }
  0xe8   :  { %3617 = vtanh.f32 %v461_v17  ;;  %v462_v24 = vmul.f32 0.5, %v168_v18  ;;  %v464_v25 = vmul.f32 0.5, %v257_v19  ;;  %v326_v34 = vadd.f32 %v325_v21, %v4174_v37 }
  0xe9   :  { %3619 = vtanh.f32 %v463_v20  ;;  %v327_v27 = vpop.f32.mrf.mxu0  ;;  %v416_v28 = vpop.f32.mrf.mxu1  ;;  %v415_v39 = vadd.f32 %v414_v22, %v4174_v37 }
  0xea   :  { %3621 = vtanh.f32 %v462_v24  ;;  %v328_v30 = vadd.f32 %v327_v27, %v4174_v37  ;;  %v3600_v33 = vpop.eup %3599  ;;  %v417_v48 = vadd.f32 %v416_v28, %v4174_v37  ;;  %v4211_v54 = vmul.f32 0.5, %v326_v34 }
  0xeb   :  { %3623 = vtanh.f32 %v464_v25  ;;  %v331_v31 = vpop.f32.mrf.mxu0  ;;  %v420_v32 = vpop.f32.mrf.mxu1  ;;  %v4205_v47 = vmul.f32 0.5, %v3600_v33  ;;  %v4214_v58 = vmul.f32 0.5, %v415_v39 }
  0xec   :  { %3625 = vtanh.f32 %v448_v23  ;;  %v442_v35 = vmul.f32 0.5, %v328_v30  ;;  %v332_v36 = vadd.f32 %v331_v31, %v4177_v43  ;;  %v4201_v38 = vpop.eup %3601  ;;  %v421_v63 = vadd.f32 %v420_v32, %v4177_v43 }
  0xed   :  { %3627 = vtanh.f32 %v440_v26  ;;  %v333_v40 = vpop.f32.mrf.mxu0  ;;  %v422_v41 = vpop.f32.mrf.mxu1  ;;  %v4219_v5 = vmul.f32 0.5, %v417_v48 }
  0xee   :  { %v3604_v42 = vpop.eup %3603  ;;  %3629 = vtanh.f32 %v439_v29  ;;  %v449_v44 = vmul.f32 0.5, %v332_v36  ;;  %v334_v45 = vadd.f32 %v333_v40, %v4177_v43  ;;  %v423_v49 = vadd.f32 %v422_v41, %v4177_v43 }
  0xef   :  { %v3606_v46 = vpop.eup %3605  ;;  %v337_v50 = vpop.f32.mrf.mxu0  ;;  %3631 = vtanh.f32 %v442_v35  ;;  %v509_v11 = vmul.f32 0.5, %v3604_v42  ;;  %v451_v20 = vmul.f32 0.5, %v421_v63 }
  0xf0   :  { %v426_v51 = vpop.f32.mrf.mxu1  ;;  %v4209_v52 = vpop.eup %3607  ;;  %v450_v55 = vmul.f32 0.5, %v334_v45  ;;  %v338_v56 = vadd.f32 %v337_v50, %v4182_v53  ;;  %3633 = vtanh.f32 %v449_v44  ;;  %v452_v59 = vmul.f32 0.5, %v423_v49 }
  0xf1   :  { %v3610_v57 = vpop.eup %3609  ;;  %v427_v60 = vadd.f32 %v426_v51, %v4182_v53  ;;  %v339_v37 = vpop.f32.mrf.mxu0  ;;  %v511_v14 = vmul.f32 0.5, %v3606_v46  ;;  %v510_v46 = vmul.f32 0.5, %v4209_v52  ;;  %v541_v52 = vadd.f32 0.5, %v509_v11 }
  0xf2   :  { %v428_v61 = vpop.f32.mrf.mxu1  ;;  %v3612_v62 = vpop.eup %3611  ;;  %3635 = vtanh.f32 %v450_v55  ;;  %v457_v2 = vmul.f32 0.5, %v338_v56  ;;  %v340_v3 = vadd.f32 %v339_v37, %v4182_v53  ;;  %v517_v31 = vmul.f32 0.5, %v3610_v57 }
  0xf3   :  { %v3614_v4 = vpop.eup %3613  ;;  %3637 = vtanh.f32 %v452_v59  ;;  %v459_v6 = vmul.f32 0.5, %v427_v60  ;;  %v429_v7 = vadd.f32 %v428_v61, %v4182_v53  ;;  %v343_v8 = vpop.f32.mrf.mxu0  ;;  %v519_v35 = vmul.f32 0.5, %v3612_v62 }
  0xf4   :  { %v432_v9 = vpop.f32.mrf.mxu1  ;;  %v3616_v10 = vpop.eup %3615  ;;  %3639 = vtanh.f32 %v457_v2  ;;  %v458_v12 = vmul.f32 0.5, %v340_v3  ;;  %v344_v13 = vadd.f32 %v343_v8, %v4187_v1  ;;  %v518_v39 = vmul.f32 0.5, %v3614_v4 }
  0xf5   :  { %v3618_v43 = vpop.eup %3617  ;;  %3641 = vtanh.f32 %v459_v6  ;;  %v460_v15 = vmul.f32 0.5, %v429_v7  ;;  %v433_v16 = vadd.f32 %v432_v9, %v4187_v1  ;;  %v345_v17 = vpop.f32.mrf.mxu0  ;;  %v549_v50 = vadd.f32 0.5, %v517_v31 }
  0xf6   :  { %v434_v18 = vpop.f32.mrf.mxu1  ;;  %v3620_v19 = vpop.eup %3619  ;;  %3643 = vtanh.f32 %v458_v12  ;;  %v465_v53 = vmul.f32 0.5, %v344_v13  ;;  %v346_v21 = vadd.f32 %v345_v17, %v4187_v1  ;;  %v525_v23 = vmul.f32 0.5, %v3618_v43 }
  0xf7   :  { %v3622_v22 = vpop.eup %3621  ;;  %3645 = vtanh.f32 %v460_v15  ;;  %v467_v24 = vmul.f32 0.5, %v433_v16  ;;  %v435_v25 = vadd.f32 %v434_v18, %v4187_v1  ;;  %v527_v27 = vmul.f32 0.5, %v3620_v19  ;;  %v4260_v15 = vld [vmem:[%s4985_s0 + $0x30] sm:$0xff] }
  0xf8   :  { %v3624_v26 = vpop.eup %3623  ;;  %3647 = vtanh.f32 %v465_v53  ;;  %v466_v28 = vmul.f32 0.5, %v346_v21  ;;  %v526_v29 = vmul.f32 0.5, %v3622_v22  ;;  %v557_v41 = vadd.f32 0.5, %v525_v23 }
  0xf9   :  { %v3626_v30 = vpop.eup %3625  ;;  %3649 = vtanh.f32 %v467_v24  ;;  %v468_v32 = vmul.f32 0.5, %v435_v25  ;;  %v528_v33 = vmul.f32 0.5, %v3624_v26  ;;  %v520_v1 = vmul.f32 0.5, %v3616_v10 }
  0xfa   :  { %v3628_v34 = vpop.eup %3627  ;;  %3651 = vtanh.f32 %v466_v28  ;;  %v558_v36 = vadd.f32 0.5, %v526_v29  ;;  %v559_v44 = vadd.f32 0.5, %v527_v27  ;;  %v550_v45 = vadd.f32 0.5, %v518_v39 }
  0xfb   :  { %v3630_v40 = vpop.eup %3629  ;;  %3653 = vtanh.f32 %v468_v32  ;;  %v560_v42 = vadd.f32 0.5, %v528_v33  ;;  %v512_v48 = vmul.f32 0.5, %v3626_v30  ;;  %v552_v51 = vadd.f32 0.5, %v520_v1 }
  0xfc   :  { %611 = vmatprep.subr.mxu0 %v558_v36  ;;  %v4227_v49 = vpop.eup %3631  ;;  %v502_v55 = vmul.f32 0.5, %v4201_v38  ;;  %v504_v56 = vmul.f32 0.5, %v3628_v34  ;;  %v503_v59 = vmul.f32 0.5, %v3630_v40  ;;  %v551_v60 = vadd.f32 0.5, %v519_v35  ;;  %v3478_v36 = vld [vmem:[%s4985_s0 + $0x38] sm:$0xff] }
  0xfd   :  { %700 = vmatprep.subr.mxu1 %v560_v42  ;;  %612 = vmatpush1.msra.mxu0 %v557_v41  ;;  %v4230_v57 = vpop.eup %3633  ;;  %3655 = vtanh.f32 %v451_v20  ;;  %v542_v37 = vadd.f32 0.5, %v510_v46  ;;  %v544_v62 = vadd.f32 0.5, %v512_v48  ;;  %v543_v2 = vadd.f32 0.5, %v511_v14 }
  0xfe   :  { %701 = vmatpush1.msra.mxu1 %v559_v44  ;;  %613 = vmatprep.subr.mxu0 %v550_v45  ;;  %3657 = vtanh.f32 %v4219_v5  ;;  %v534_v38 = vadd.f32 0.5, %v502_v55  ;;  %v533_v4 = vadd.f32 0.5, %v4205_v47  ;;  %v536_v6 = vadd.f32 0.5, %v504_v56  ;;  %v4239_v5 = vld [vmem:[%s4985_s0 + $0x20] sm:$0xff] }
  0xff   :  { %v3636_v61 = vpop.eup %3635  ;;  %702 = vmatprep.subr.mxu1 %v552_v51  ;;  %614 = vmatpush1.msra.mxu0 %v549_v50  ;;  %3659 = vtanh.f32 %v4211_v54  ;;  %v535_v8 = vadd.f32 0.5, %v503_v59  ;;  %v513_v32 = vmul.f32 0.5, %v4230_v57  ;;  %v506_v39 = vmul.f32 0.5, %v4227_v49  ;;  %v4300_v55 = vld [vmem:[#allocation2 + $0x20] sm:$0xff] }
 0x100   :  { %v3638_v63 = vpop.eup %3637  ;;  %703 = vmatpush1.msra.mxu1 %v551_v60  ;;  %615 = vmatprep.subr.mxu0 %v542_v37  ;;  %3661 = vtanh.f32 %v4214_v58  ;;  %v4249_v58 = vld [vmem:[%s4985_s0 + $0x28] sm:$0xff]  ;;  %v514_v29 = vmul.f32 0.5, %v3636_v61 }
 0x101   :  { %v3640_v3 = vpop.eup %3639  ;;  %704 = vmatprep.subr.mxu1 %v544_v62  ;;  %616 = vmatpush1.msra.mxu0 %v541_v52  ;;  %v516_v30 = vmul.f32 0.5, %v3638_v63  ;;  %v545_v45 = vadd.f32 0.5, %v513_v32  ;;  %v538_v48 = vadd.f32 0.5, %v506_v39  ;;  %v4304_v61 = vld [vmem:[#allocation2 + $0x28] sm:$0xff] }
 0x102   :  { %v3642_v7 = vpop.eup %3641  ;;  %705 = vmatpush1.msra.mxu1 %v543_v2  ;;  %617 = vmatprep.subr.mxu0 %v534_v38  ;;  %v521_v53 = vmul.f32 0.5, %v3640_v3  ;;  %v546_v1 = vadd.f32 0.5, %v514_v29 }
 0x103   :  { %v3644_v54 = vpop.eup %3643  ;;  %706 = vmatprep.subr.mxu1 %v536_v6  ;;  %618 = vmatpush1.msra.mxu0 %v533_v4  ;;  %v523_v21 = vmul.f32 0.5, %v3642_v7  ;;  %v548_v44 = vadd.f32 0.5, %v516_v30 }
 0x104   :  { %v3646_v9 = vpop.eup %3645  ;;  %707 = vmatpush1.msra.mxu1 %v535_v8  ;;  %3479 = vmatmul.mubr.msk.f32.vlgmr.msra.gmra.mxu0 %vm68_vm0, %v4239_v5  ;;  %v522_v17 = vmul.f32 0.5, %v3644_v54  ;;  %v553_v34 = vadd.f32 0.5, %v521_v53  ;;  %v4310_v54 = vld [vmem:[#allocation2 + $0x30] sm:$0xff] }
 0x105   :  { %v3648_v47 = vpop.eup %3647  ;;  %3483 = vmatmul.mubr.msk.f32.vlgmr.msra.gmra.mxu1 %vm68_vm0, %v4239_v5  ;;  %657 = vmatprep.mubr.f32.mxu0 %v4008_v0  ;;  %v524_v18 = vmul.f32 0.5, %v3646_v9  ;;  %v555_v35 = vadd.f32 0.5, %v523_v21 }
 0x106   :  { %v3650_v10 = vpop.eup %3649  ;;  %746 = vmatprep.mubr.f32.mxu1 %v4008_v0  ;;  %v529_v13 = vmul.f32 0.5, %v3648_v47  ;;  %v554_v27 = vadd.f32 0.5, %v522_v17 }
 0x107   :  { %v3652_v11 = vpop.eup %3651  ;;  %v531_v43 = vmul.f32 0.5, %v3650_v10  ;;  %v556_v28 = vadd.f32 0.5, %v524_v18 }
 0x108   :  { %v3654_v12 = vpop.eup %3653  ;;  %3480 = vmatmul.mubr.msk.f32.gmra.mxu0 %vm68_vm0, %v4249_v58  ;;  %v530_v14 = vmul.f32 0.5, %v3652_v11  ;;  %v561_v24 = vadd.f32 0.5, %v529_v13 }
 0x109   :  { %3484 = vmatmul.mubr.msk.f32.gmra.mxu1 %vm68_vm0, %v4249_v58  ;;  %663 = vmatprep.mubr.f32.mxu0 %v4008_v0  ;;  %v532_v16 = vmul.f32 0.5, %v3654_v12  ;;  %v563_v25 = vadd.f32 0.5, %v531_v43 }
 0x10a   :  { %752 = vmatprep.mubr.f32.mxu1 %v4008_v0  ;;  %v562_v19 = vadd.f32 0.5, %v530_v14  ;;  %v3656_v20 = vpop.eup %3655 }
 0x10b   :  { %v564_v22 = vadd.f32 0.5, %v532_v16  ;;  %v3658_v23 = vpop.eup %3657  ;;  %v515_v33 = vmul.f32 0.5, %v3656_v20  ;;  %v4316_v20 = vld [vmem:[#allocation2 + $0x38] sm:$0xff] }
 0x10c   :  { %3481 = vmatmul.mubr.msk.f32.gmra.mxu0 %vm68_vm0, %v4260_v15  ;;  %789 = vmatprep.subr.mxu0 %v562_v19  ;;  %v3660_v26 = vpop.eup %3659  ;;  %v508_v40 = vmul.f32 0.5, %v3658_v23 }
 0x10d   :  { %3485 = vmatmul.mubr.msk.f32.gmra.mxu1 %vm68_vm0, %v4260_v15  ;;  %878 = vmatprep.subr.mxu1 %v564_v22  ;;  %v3662_v31 = vpop.eup %3661  ;;  %v505_v41 = vmul.f32 0.5, %v3660_v26  ;;  %v547_v46 = vadd.f32 0.5, %v515_v33 }
 0x10e   :  { %790 = vmatpush1.msra.mxu0 %v561_v24  ;;  %879 = vmatpush1.msra.mxu1 %v563_v25  ;;  %v507_v42 = vmul.f32 0.5, %v3662_v31  ;;  %v540_v49 = vadd.f32 0.5, %v508_v40 }
 0x10f   :  { %791 = vmatprep.subr.mxu0 %v554_v27  ;;  %880 = vmatprep.subr.mxu1 %v556_v28  ;;  %v537_v50 = vadd.f32 0.5, %v505_v41 }
 0x110   :  { %669 = vmatprep.mubr.f32.mxu0 %v4008_v0  ;;  %758 = vmatprep.mubr.f32.mxu1 %v4008_v0  ;;  %v539_v51 = vadd.f32 0.5, %v507_v42 }
 0x111   :  { %792 = vmatpush1.msra.mxu0 %v553_v34  ;;  %881 = vmatpush1.msra.mxu1 %v555_v35 }
 0x112   :  { %3482 = vmatmul.mubr.msk.f32.gmra.mxu0 %vm68_vm0, %v3478_v36  ;;  %3486 = vmatmul.mubr.msk.f32.gmra.mxu1 %vm68_vm0, %v3478_v36 }
 0x113   :  { %793 = vmatprep.subr.mxu0 %v546_v1  ;;  %882 = vmatprep.subr.mxu1 %v548_v44 }
 0x114   :  { %794 = vmatpush1.msra.mxu0 %v545_v45  ;;  %883 = vmatpush1.msra.mxu1 %v547_v46 }
 0x115   :  { %795 = vmatprep.subr.mxu0 %v538_v48  ;;  %884 = vmatprep.subr.mxu1 %v540_v49 }
 0x116   :  { %796 = vmatpush1.msra.mxu0 %v537_v50  ;;  %829 = vmatprep.mubr.f32.mxu0 %v4008_v0 }
 0x117   :  { %885 = vmatpush1.msra.mxu1 %v539_v51  ;;  %918 = vmatprep.mubr.f32.mxu1 %v4008_v0 }
 0x118   :  { %3487 = vmatmul.mubr.msk.f32.vlgmr.msra.gmra.mxu0 %vm68_vm0, %v4239_v5  ;;  %3491 = vmatmul.mubr.msk.f32.vlgmr.msra.gmra.mxu1 %vm68_vm0, %v4239_v5 }
 0x119   :  { %835 = vmatprep.mubr.f32.mxu0 %v4008_v0  ;;  %924 = vmatprep.mubr.f32.mxu1 %v4008_v0 }
 0x11c   :  { %3488 = vmatmul.mubr.msk.f32.gmra.mxu0 %vm68_vm0, %v4249_v58  ;;  %3492 = vmatmul.mubr.msk.f32.gmra.mxu1 %vm68_vm0, %v4249_v58 }
 0x11d   :  { %841 = vmatprep.mubr.f32.mxu0 %v4008_v0  ;;  %930 = vmatprep.mubr.f32.mxu1 %v4008_v0 }
 0x120   :  { %3489 = vmatmul.mubr.msk.f32.gmra.mxu0 %vm68_vm0, %v4260_v15  ;;  %3493 = vmatmul.mubr.msk.f32.gmra.mxu1 %vm68_vm0, %v4260_v15 }
 0x121   :  { %847 = vmatprep.mubr.f32.mxu0 %v4008_v0  ;;  %936 = vmatprep.mubr.f32.mxu1 %v4008_v0 }
 0x124   :  { %3490 = vmatmul.mubr.msk.f32.gmra.mxu0 %vm68_vm0, %v3478_v36  ;;  %3494 = vmatmul.mubr.msk.f32.gmra.mxu1 %vm68_vm0, %v3478_v36 }
 0x125   :  { %1157 = vmatprep.mubr.f32.mxu0 %v4008_v0  ;;  %1246 = vmatprep.mubr.f32.mxu1 %v4008_v0 }
 0x1c4   :  { %v653_v56 = vpop.f32.mrf.mxu0 }
 0x1c5   :  { %v654_v57 = vadd.f32 %v653_v56, %v4300_v55  ;;  %v742_v59 = vpop.f32.mrf.mxu1 }
 0x1c6   :  { %v743_v60 = vadd.f32 %v742_v59, %v4300_v55  ;;  %v655_v37 = vpop.f32.mrf.mxu0 }
 0x1c7   :  { %v656_v52 = vadd.f32 %v655_v37, %v4300_v55  ;;  %v744_v62 = vpop.f32.mrf.mxu1  ;;  %v943_v63 = vmul.f32 0.5, %v654_v57 }
 0x1c8   :  { %v745_v2 = vadd.f32 %v744_v62, %v4300_v55  ;;  %v659_v38 = vpop.f32.mrf.mxu0  ;;  %v945_v3 = vmul.f32 0.5, %v743_v60 }
 0x1c9   :  { %v660_v4 = vadd.f32 %v659_v38, %v4304_v61  ;;  %v748_v6 = vpop.f32.mrf.mxu1  ;;  %v944_v5 = vmul.f32 0.5, %v656_v52  ;;  %3663 = vtanh.f32 %v943_v63 }
 0x1ca   :  { %v749_v7 = vadd.f32 %v748_v6, %v4304_v61  ;;  %v661_v8 = vpop.f32.mrf.mxu0  ;;  %v946_v9 = vmul.f32 0.5, %v745_v2  ;;  %3665 = vtanh.f32 %v945_v3 }
 0x1cb   :  { %v750_v47 = vpop.f32.mrf.mxu1  ;;  %v951_v58 = vmul.f32 0.5, %v660_v4  ;;  %3667 = vtanh.f32 %v944_v5  ;;  %v662_v24 = vadd.f32 %v661_v8, %v4304_v61 }
 0x1cc   :  { %v665_v10 = vpop.f32.mrf.mxu0  ;;  %v953_v11 = vmul.f32 0.5, %v749_v7  ;;  %3669 = vtanh.f32 %v946_v9  ;;  %v751_v27 = vadd.f32 %v750_v47, %v4304_v61 }
 0x1cd   :  { %v666_v12 = vadd.f32 %v665_v10, %v4310_v54  ;;  %v754_v13 = vpop.f32.mrf.mxu1  ;;  %3671 = vtanh.f32 %v951_v58  ;;  %v952_v34 = vmul.f32 0.5, %v662_v24 }
 0x1ce   :  { %v755_v43 = vadd.f32 %v754_v13, %v4310_v54  ;;  %v667_v14 = vpop.f32.mrf.mxu0  ;;  %3673 = vtanh.f32 %v953_v11  ;;  %v954_v39 = vmul.f32 0.5, %v751_v27 }
 0x1cf   :  { %v959_v15 = vmul.f32 0.5, %v666_v12  ;;  %v668_v16 = vadd.f32 %v667_v14, %v4310_v54  ;;  %v756_v17 = vpop.f32.mrf.mxu1 }
 0x1d0   :  { %v961_v18 = vmul.f32 0.5, %v755_v43  ;;  %v757_v19 = vadd.f32 %v756_v17, %v4310_v54 }
 0x1d1   :  { %v960_v53 = vmul.f32 0.5, %v668_v16  ;;  %3675 = vtanh.f32 %v959_v15 }
 0x1d2   :  { %v962_v21 = vmul.f32 0.5, %v757_v19  ;;  %v671_v22 = vpop.f32.mrf.mxu0  ;;  %v760_v23 = vpop.f32.mrf.mxu1  ;;  %3677 = vtanh.f32 %v961_v18 }
 0x1d3   :  { %v672_v25 = vadd.f32 %v671_v22, %v4316_v20  ;;  %v761_v26 = vadd.f32 %v760_v23, %v4316_v20  ;;  %3679 = vtanh.f32 %v960_v53 }
 0x1d4   :  { %v673_v28 = vpop.f32.mrf.mxu0  ;;  %v762_v29 = vpop.f32.mrf.mxu1  ;;  %3681 = vtanh.f32 %v962_v21 }
 0x1d5   :  { %v967_v30 = vmul.f32 0.5, %v672_v25  ;;  %v969_v31 = vmul.f32 0.5, %v761_v26  ;;  %v674_v32 = vadd.f32 %v673_v28, %v4316_v20  ;;  %v763_v33 = vadd.f32 %v762_v29, %v4316_v20 }
 0x1d6   :  { %v3664_v42 = vpop.eup %3663 }
 0x1d7   :  { %3683 = vtanh.f32 %v967_v30  ;;  %v968_v35 = vmul.f32 0.5, %v674_v32  ;;  %v970_v36 = vmul.f32 0.5, %v763_v33  ;;  %v3666_v1 = vpop.eup %3665  ;;  %v4327_v2 = vmul.f32 0.5, %v3664_v42 }
 0x1d8   :  { %3685 = vtanh.f32 %v969_v31  ;;  %v831_v40 = vpop.f32.mrf.mxu0  ;;  %v920_v41 = vpop.f32.mrf.mxu1  ;;  %v4329_v38 = vmul.f32 0.5, %v3666_v1 }
 0x1d9   :  { %3687 = vtanh.f32 %v968_v35  ;;  %v3668_v46 = vpop.eup %3667  ;;  %v4333_v5 = vadd.f32 %v831_v40, %v4300_v55  ;;  %v4336_v7 = vadd.f32 %v920_v41, %v4300_v55 }
 0x1da   :  { %3689 = vtanh.f32 %v970_v36  ;;  %v833_v44 = vpop.f32.mrf.mxu0  ;;  %v922_v45 = vpop.f32.mrf.mxu1  ;;  %v4338_v47 = vmul.f32 0.5, %v3668_v46 }
 0x1db   :  { %3691 = vtanh.f32 %v952_v34  ;;  %v834_v48 = vadd.f32 %v833_v44, %v4300_v55  ;;  %v3670_v49 = vpop.eup %3669  ;;  %v923_v37 = vadd.f32 %v922_v45, %v4300_v55 }
 0x1dc   :  { %3693 = vtanh.f32 %v954_v39  ;;  %v837_v50 = vpop.f32.mrf.mxu0  ;;  %v926_v51 = vpop.f32.mrf.mxu1  ;;  %v4340_v58 = vmul.f32 0.5, %v3670_v49 }
 0x1dd   :  { %v3672_v56 = vpop.eup %3671  ;;  %v838_v57 = vadd.f32 %v837_v50, %v4304_v61  ;;  %v948_v60 = vmul.f32 0.5, %v834_v48  ;;  %v4347_v14 = vmul.f32 0.5, %v923_v37  ;;  %v927_v55 = vadd.f32 %v926_v51, %v4304_v61 }
 0x1de   :  { %v3674_v59 = vpop.eup %3673  ;;  %v839_v52 = vpop.f32.mrf.mxu0  ;;  %v4342_v11 = vmul.f32 0.5, %v3672_v56 }
 0x1df   :  { %v928_v62 = vpop.f32.mrf.mxu1  ;;  %v3676_v63 = vpop.eup %3675  ;;  %v955_v3 = vmul.f32 0.5, %v838_v57  ;;  %v840_v4 = vadd.f32 %v839_v52, %v4304_v61  ;;  %v4344_v12 = vmul.f32 0.5, %v3674_v59  ;;  %3695 = vtanh.f32 %v948_v60 }
 0x1e0   :  { %v3678_v6 = vpop.eup %3677  ;;  %v843_v8 = vpop.f32.mrf.mxu0  ;;  %v1023_v23 = vmul.f32 0.5, %v3676_v63  ;;  %v929_v24 = vadd.f32 %v928_v62, %v4304_v61  ;;  %v957_v57 = vmul.f32 0.5, %v927_v55 }
 0x1e1   :  { %v932_v9 = vpop.f32.mrf.mxu1  ;;  %v3680_v10 = vpop.eup %3679  ;;  %v956_v13 = vmul.f32 0.5, %v840_v4  ;;  %v844_v43 = vadd.f32 %v843_v8, %v4310_v54  ;;  %3697 = vtanh.f32 %v955_v3  ;;  %v1025_v56 = vmul.f32 0.5, %v3678_v6 }
 0x1e2   :  { %v933_v15 = vadd.f32 %v932_v9, %v4310_v54  ;;  %v845_v16 = vpop.f32.mrf.mxu0  ;;  %v3682_v18 = vpop.eup %3681  ;;  %v1024_v31 = vmul.f32 0.5, %v3680_v10  ;;  %v958_v59 = vmul.f32 0.5, %v929_v24  ;;  %v947_v3 = vmul.f32 0.5, %v4333_v5 }
 0x1e3   :  { %v934_v17 = vpop.f32.mrf.mxu1  ;;  %v963_v19 = vmul.f32 0.5, %v844_v43  ;;  %v846_v53 = vadd.f32 %v845_v16, %v4310_v54  ;;  %3699 = vtanh.f32 %v956_v13  ;;  %v1026_v36 = vmul.f32 0.5, %v3682_v18 }
 0x1e4   :  { %v935_v21 = vadd.f32 %v934_v17, %v4310_v54  ;;  %v3684_v22 = vpop.eup %3683  ;;  %v965_v25 = vmul.f32 0.5, %v933_v15  ;;  %v849_v26 = vpop.f32.mrf.mxu0  ;;  %v1056_v4 = vadd.f32 0.5, %v1024_v31  ;;  %v1055_v9 = vadd.f32 0.5, %v1023_v23 }
 0x1e5   :  { %v938_v27 = vpop.f32.mrf.mxu1  ;;  %v3686_v28 = vpop.eup %3685  ;;  %3701 = vtanh.f32 %v963_v19  ;;  %v964_v29 = vmul.f32 0.5, %v846_v53  ;;  %v850_v33 = vadd.f32 %v849_v26, %v4316_v20  ;;  %v1031_v40 = vmul.f32 0.5, %v3684_v22  ;;  %v4396_v26 = vld [vmem:[%s4985_s0 + $0x50] sm:$0xff] }
 0x1e6   :  { %v966_v30 = vmul.f32 0.5, %v935_v21  ;;  %v3688_v32 = vpop.eup %3687  ;;  %3703 = vtanh.f32 %v965_v25  ;;  %v939_v34 = vadd.f32 %v938_v27, %v4316_v20  ;;  %v851_v54 = vpop.f32.mrf.mxu0  ;;  %v1033_v1 = vmul.f32 0.5, %v3686_v28 }
 0x1e7   :  { %v940_v35 = vpop.f32.mrf.mxu1  ;;  %v3690_v39 = vpop.eup %3689  ;;  %3705 = vtanh.f32 %v964_v29  ;;  %v852_v61 = vadd.f32 %v851_v54, %v4316_v20  ;;  %v971_v44 = vmul.f32 0.5, %v850_v33  ;;  %v1032_v50 = vmul.f32 0.5, %v3688_v32 }
 0x1e8   :  { %v941_v41 = vadd.f32 %v940_v35, %v4316_v20  ;;  %v3692_v42 = vpop.eup %3691  ;;  %3707 = vtanh.f32 %v966_v30  ;;  %v973_v45 = vmul.f32 0.5, %v939_v34  ;;  %v1034_v51 = vmul.f32 0.5, %v3690_v39 }
 0x1e9   :  { %v3694_v46 = vpop.eup %3693  ;;  %v972_v48 = vmul.f32 0.5, %v852_v61  ;;  %3709 = vtanh.f32 %v971_v44  ;;  %v1064_v60 = vadd.f32 0.5, %v1032_v50  ;;  %v1016_v52 = vmul.f32 0.5, %v3692_v42 }
 0x1ea   :  { %v974_v49 = vmul.f32 0.5, %v941_v41  ;;  %3711 = vtanh.f32 %v973_v45  ;;  %v1066_v37 = vadd.f32 0.5, %v1034_v51  ;;  %v1063_v62 = vadd.f32 0.5, %v1031_v40  ;;  %v3498_v51 = vld [vmem:[%s4985_s0 + $0x58] sm:$0xff] }
 0x1eb   :  { %v1065_v20 = vadd.f32 0.5, %v1033_v1  ;;  %3713 = vtanh.f32 %v972_v48  ;;  %v1018_v63 = vmul.f32 0.5, %v3694_v46  ;;  %1117 = vmatprep.subr.mxu0 %v1064_v60  ;;  %v1058_v8 = vadd.f32 0.5, %v1026_v36 }
 0x1ec   :  { %3715 = vtanh.f32 %v974_v49  ;;  %1206 = vmatprep.subr.mxu1 %v1066_v37  ;;  %v1057_v6 = vadd.f32 0.5, %v1025_v56  ;;  %v949_v10 = vmul.f32 0.5, %v4336_v7  ;;  %1118 = vmatpush1.msra.mxu0 %v1063_v62  ;;  %v4360_v13 = vpop.eup %3695  ;;  %v1048_v43 = vadd.f32 0.5, %v1016_v52 }
 0x1ed   :  { %3717 = vtanh.f32 %v958_v59  ;;  %1207 = vmatpush1.msra.mxu1 %v1065_v20  ;;  %1119 = vmatprep.subr.mxu0 %v1056_v4  ;;  %v1050_v55 = vadd.f32 0.5, %v1018_v63  ;;  %v1047_v15 = vadd.f32 0.5, %v4342_v11  ;;  %v1049_v16 = vadd.f32 0.5, %v4344_v12  ;;  %v4374_v11 = vld [vmem:[%s4985_s0 + $0x40] sm:$0xff] }
 0x1ee   :  { %3719 = vtanh.f32 %v957_v57  ;;  %1208 = vmatprep.subr.mxu1 %v1058_v8  ;;  %v4362_v5 = vpop.eup %3697  ;;  %1120 = vmatpush1.msra.mxu0 %v1055_v9  ;;  %v1040_v17 = vadd.f32 0.5, %v4338_v47  ;;  %v1042_v18 = vadd.f32 0.5, %v4340_v58  ;;  %v1039_v53 = vadd.f32 0.5, %v4327_v2  ;;  %v4385_v2 = vld [vmem:[%s4985_s0 + $0x48] sm:$0xff]  ;;  %v4435_v9 = vld [vmem:[#allocation2 + $0x40] sm:$0xff] }
 0x1ef   :  { %3721 = vtanh.f32 %v4347_v14  ;;  %1209 = vmatpush1.msra.mxu1 %v1057_v6  ;;  %1121 = vmatprep.subr.mxu0 %v1048_v43  ;;  %v1041_v21 = vadd.f32 0.5, %v4329_v38  ;;  %v1019_v45 = vmul.f32 0.5, %v4362_v5  ;;  %v1012_v56 = vmul.f32 0.5, %v4360_v13 }
 0x1f0   :  { %v3700_v7 = vpop.eup %3699  ;;  %3723 = vtanh.f32 %v947_v3  ;;  %1210 = vmatprep.subr.mxu1 %v1050_v55  ;;  %1122 = vmatpush1.msra.mxu0 %v1047_v15  ;;  %v4439_v15 = vld [vmem:[#allocation2 + $0x48] sm:$0xff] }
 0x1f1   :  { %3725 = vtanh.f32 %v949_v10  ;;  %1211 = vmatpush1.msra.mxu1 %v1049_v16  ;;  %1123 = vmatprep.subr.mxu0 %v1040_v17  ;;  %v1020_v42 = vmul.f32 0.5, %v3700_v7  ;;  %v1051_v62 = vadd.f32 0.5, %v1019_v45  ;;  %v1044_v63 = vadd.f32 0.5, %v1012_v56 }
 0x1f2   :  { %v3702_v19 = vpop.eup %3701  ;;  %1212 = vmatprep.subr.mxu1 %v1042_v18  ;;  %1124 = vmatpush1.msra.mxu0 %v1039_v53 }
 0x1f3   :  { %v3704_v12 = vpop.eup %3703  ;;  %1213 = vmatpush1.msra.mxu1 %v1041_v21  ;;  %3499 = vmatmul.mubr.msk.f32.vlgmr.msra.gmra.mxu0 %vm68_vm0, %v4374_v11  ;;  %v1027_v33 = vmul.f32 0.5, %v3702_v19  ;;  %v1052_v37 = vadd.f32 0.5, %v1020_v42 }
 0x1f4   :  { %v3706_v14 = vpop.eup %3705  ;;  %3503 = vmatmul.mubr.msk.f32.vlgmr.msra.gmra.mxu1 %vm68_vm0, %v4374_v11  ;;  %1163 = vmatprep.mubr.f32.mxu0 %v4008_v0  ;;  %v1029_v34 = vmul.f32 0.5, %v3704_v12 }
 0x1f5   :  { %v3708_v47 = vpop.eup %3707  ;;  %1252 = vmatprep.mubr.f32.mxu1 %v4008_v0  ;;  %v1028_v28 = vmul.f32 0.5, %v3706_v14  ;;  %v1059_v49 = vadd.f32 0.5, %v1027_v33  ;;  %v4451_v33 = vld [vmem:[#allocation2 + $0x58] sm:$0xff] }
 0x1f6   :  { %v3710_v38 = vpop.eup %3709  ;;  %v1030_v31 = vmul.f32 0.5, %v3708_v47  ;;  %v1061_v50 = vadd.f32 0.5, %v1029_v34 }
 0x1f7   :  { %v3712_v58 = vpop.eup %3711  ;;  %v1035_v23 = vmul.f32 0.5, %v3710_v38  ;;  %3500 = vmatmul.mubr.msk.f32.gmra.mxu0 %vm68_vm0, %v4385_v2  ;;  %v1060_v41 = vadd.f32 0.5, %v1028_v28 }
 0x1f8   :  { %v3714_v22 = vpop.eup %3713  ;;  %3504 = vmatmul.mubr.msk.f32.gmra.mxu1 %vm68_vm0, %v4385_v2  ;;  %v1037_v25 = vmul.f32 0.5, %v3712_v58  ;;  %1169 = vmatprep.mubr.f32.mxu0 %v4008_v0  ;;  %v1062_v48 = vadd.f32 0.5, %v1030_v31 }
 0x1f9   :  { %v3716_v24 = vpop.eup %3715  ;;  %1258 = vmatprep.mubr.f32.mxu1 %v4008_v0  ;;  %v1036_v27 = vmul.f32 0.5, %v3714_v22  ;;  %v1067_v36 = vadd.f32 0.5, %v1035_v23 }
 0x1fa   :  { %v3718_v29 = vpop.eup %3717  ;;  %v1038_v30 = vmul.f32 0.5, %v3716_v24  ;;  %v1069_v61 = vadd.f32 0.5, %v1037_v25 }
 0x1fb   :  { %v3720_v32 = vpop.eup %3719  ;;  %v1068_v54 = vadd.f32 0.5, %v1036_v27  ;;  %3501 = vmatmul.mubr.msk.f32.gmra.mxu0 %vm68_vm0, %v4396_v26  ;;  %v1022_v1 = vmul.f32 0.5, %v3718_v29 }
 0x1fc   :  { %v3722_v35 = vpop.eup %3721  ;;  %3505 = vmatmul.mubr.msk.f32.gmra.mxu1 %vm68_vm0, %v4396_v26  ;;  %v1070_v39 = vadd.f32 0.5, %v1038_v30  ;;  %1175 = vmatprep.mubr.f32.mxu0 %v4008_v0  ;;  %v1021_v46 = vmul.f32 0.5, %v3720_v32 }
 0x1fd   :  { %v3724_v40 = vpop.eup %3723  ;;  %1295 = vmatprep.subr.mxu0 %v1068_v54  ;;  %v1014_v57 = vmul.f32 0.5, %v3722_v35  ;;  %1264 = vmatprep.mubr.f32.mxu1 %v4008_v0  ;;  %v1054_v52 = vadd.f32 0.5, %v1022_v1 }
 0x1fe   :  { %v3726_v44 = vpop.eup %3725  ;;  %1384 = vmatprep.subr.mxu1 %v1070_v39  ;;  %1296 = vmatpush1.msra.mxu0 %v1067_v36  ;;  %v1011_v59 = vmul.f32 0.5, %v3724_v40  ;;  %v1053_v20 = vadd.f32 0.5, %v1021_v46 }
 0x1ff   :  { %1385 = vmatpush1.msra.mxu1 %v1069_v61  ;;  %1297 = vmatprep.subr.mxu0 %v1060_v41  ;;  %v1013_v60 = vmul.f32 0.5, %v3726_v44  ;;  %v1046_v3 = vadd.f32 0.5, %v1014_v57 }
 0x200   :  { %1386 = vmatprep.subr.mxu1 %v1062_v48  ;;  %1298 = vmatpush1.msra.mxu0 %v1059_v49  ;;  %v1043_v4 = vadd.f32 0.5, %v1011_v59 }
 0x201   :  { %1387 = vmatpush1.msra.mxu1 %v1061_v50  ;;  %3502 = vmatmul.mubr.msk.f32.gmra.mxu0 %vm68_vm0, %v3498_v51  ;;  %v1045_v8 = vadd.f32 0.5, %v1013_v60 }
 0x202   :  { %3506 = vmatmul.mubr.msk.f32.gmra.mxu1 %vm68_vm0, %v3498_v51  ;;  %1299 = vmatprep.subr.mxu0 %v1052_v37 }
 0x203   :  { %1388 = vmatprep.subr.mxu1 %v1054_v52  ;;  %1300 = vmatpush1.msra.mxu0 %v1051_v62 }
 0x204   :  { %1389 = vmatpush1.msra.mxu1 %v1053_v20  ;;  %1301 = vmatprep.subr.mxu0 %v1044_v63 }
 0x205   :  { %1390 = vmatprep.subr.mxu1 %v1046_v3  ;;  %1302 = vmatpush1.msra.mxu0 %v1043_v4 }
 0x206   :  { %1335 = vmatprep.mubr.f32.mxu0 %v4008_v0  ;;  %1391 = vmatpush1.msra.mxu1 %v1045_v8 }
 0x207   :  { %1424 = vmatprep.mubr.f32.mxu1 %v4008_v0  ;;  %3507 = vmatmul.mubr.msk.f32.vlgmr.msra.gmra.mxu0 %vm68_vm0, %v4374_v11 }
 0x208   :  { %3511 = vmatmul.mubr.msk.f32.vlgmr.msra.gmra.mxu1 %vm68_vm0, %v4374_v11  ;;  %1341 = vmatprep.mubr.f32.mxu0 %v4008_v0 }
 0x209   :  { %1430 = vmatprep.mubr.f32.mxu1 %v4008_v0 }
 0x20b   :  { %3508 = vmatmul.mubr.msk.f32.gmra.mxu0 %vm68_vm0, %v4385_v2 }
 0x20c   :  { %3512 = vmatmul.mubr.msk.f32.gmra.mxu1 %vm68_vm0, %v4385_v2  ;;  %1347 = vmatprep.mubr.f32.mxu0 %v4008_v0  ;;  %v4445_v2 = vld [vmem:[#allocation2 + $0x50] sm:$0xff] }
 0x20d   :  { %1436 = vmatprep.mubr.f32.mxu1 %v4008_v0 }
 0x20f   :  { %3509 = vmatmul.mubr.msk.f32.gmra.mxu0 %vm68_vm0, %v4396_v26 }
 0x210   :  { %3513 = vmatmul.mubr.msk.f32.gmra.mxu1 %vm68_vm0, %v4396_v26  ;;  %1353 = vmatprep.mubr.f32.mxu0 %v4008_v0 }
 0x211   :  { %1442 = vmatprep.mubr.f32.mxu1 %v4008_v0 }
 0x213   :  { %3510 = vmatmul.mubr.msk.f32.gmra.mxu0 %vm68_vm0, %v3498_v51 }
 0x214   :  { %3514 = vmatmul.mubr.msk.f32.gmra.mxu1 %vm68_vm0, %v3498_v51  ;;  %1663 = vmatprep.mubr.f32.mxu0 %v4008_v0 }
 0x215   :  { %1752 = vmatprep.mubr.f32.mxu1 %v4008_v0 }
 0x2b3   :  { %v1159_v6 = vpop.f32.mrf.mxu0 }
 0x2b4   :  { %v1248_v10 = vpop.f32.mrf.mxu1  ;;  %v1160_v13 = vadd.f32 %v1159_v6, %v4435_v9 }
 0x2b5   :  { %v1249_v43 = vadd.f32 %v1248_v10, %v4435_v9  ;;  %v1161_v55 = vpop.f32.mrf.mxu0 }
 0x2b6   :  { %v1250_v5 = vpop.f32.mrf.mxu1  ;;  %v1162_v16 = vadd.f32 %v1161_v55, %v4435_v9  ;;  %v1449_v17 = vmul.f32 0.5, %v1160_v13 }
 0x2b7   :  { %v1251_v7 = vadd.f32 %v1250_v5, %v4435_v9  ;;  %v1165_v18 = vpop.f32.mrf.mxu0  ;;  %v1451_v53 = vmul.f32 0.5, %v1249_v43 }
 0x2b8   :  { %v1254_v19 = vpop.f32.mrf.mxu1  ;;  %v1166_v21 = vadd.f32 %v1165_v18, %v4439_v15  ;;  %v1450_v11 = vmul.f32 0.5, %v1162_v16  ;;  %3727 = vtanh.f32 %v1449_v17 }
 0x2b9   :  { %v1255_v12 = vadd.f32 %v1254_v19, %v4439_v15  ;;  %v1167_v14 = vpop.f32.mrf.mxu0  ;;  %v1452_v38 = vmul.f32 0.5, %v1251_v7  ;;  %3729 = vtanh.f32 %v1451_v53 }
 0x2ba   :  { %v1256_v47 = vpop.f32.mrf.mxu1  ;;  %v1457_v58 = vmul.f32 0.5, %v1166_v21  ;;  %3731 = vtanh.f32 %v1450_v11  ;;  %v1168_v39 = vadd.f32 %v1167_v14, %v4439_v15 }
 0x2bb   :  { %v1171_v22 = vpop.f32.mrf.mxu0  ;;  %v1459_v24 = vmul.f32 0.5, %v1255_v12  ;;  %3733 = vtanh.f32 %v1452_v38  ;;  %v1257_v41 = vadd.f32 %v1256_v47, %v4439_v15 }
 0x2bc   :  { %v1260_v23 = vpop.f32.mrf.mxu1  ;;  %v1172_v25 = vadd.f32 %v1171_v22, %v4445_v2  ;;  %3735 = vtanh.f32 %v1457_v58  ;;  %v1458_v49 = vmul.f32 0.5, %v1168_v39 }
 0x2bd   :  { %v1261_v26 = vadd.f32 %v1260_v23, %v4445_v2  ;;  %v1173_v27 = vpop.f32.mrf.mxu0  ;;  %3737 = vtanh.f32 %v1459_v24  ;;  %v1460_v56 = vmul.f32 0.5, %v1257_v41 }
 0x2be   :  { %v1262_v28 = vpop.f32.mrf.mxu1  ;;  %v1465_v29 = vmul.f32 0.5, %v1172_v25  ;;  %v1174_v30 = vadd.f32 %v1173_v27, %v4445_v2 }
 0x2bf   :  { %v1263_v31 = vadd.f32 %v1262_v28, %v4445_v2  ;;  %v1467_v32 = vmul.f32 0.5, %v1261_v26 }
 0x2c0   :  { %v1466_v34 = vmul.f32 0.5, %v1174_v30  ;;  %3739 = vtanh.f32 %v1465_v29 }
 0x2c1   :  { %v1468_v54 = vmul.f32 0.5, %v1263_v31  ;;  %v1177_v35 = vpop.f32.mrf.mxu0  ;;  %3741 = vtanh.f32 %v1467_v32 }
 0x2c2   :  { %v1266_v36 = vpop.f32.mrf.mxu1  ;;  %v1178_v40 = vadd.f32 %v1177_v35, %v4451_v33  ;;  %3743 = vtanh.f32 %v1466_v34 }
 0x2c3   :  { %v1267_v61 = vadd.f32 %v1266_v36, %v4451_v33  ;;  %v1179_v42 = vpop.f32.mrf.mxu0  ;;  %3745 = vtanh.f32 %v1468_v54 }
 0x2c4   :  { %v1268_v1 = vpop.f32.mrf.mxu1  ;;  %v1473_v44 = vmul.f32 0.5, %v1178_v40  ;;  %v1180_v46 = vadd.f32 %v1179_v42, %v4451_v33 }
 0x2c5   :  { %v1475_v45 = vmul.f32 0.5, %v1267_v61  ;;  %v1269_v48 = vadd.f32 %v1268_v1, %v4451_v33  ;;  %v3728_v60 = vpop.eup %3727 }
 0x2c6   :  { %3747 = vtanh.f32 %v1473_v44  ;;  %v1474_v50 = vmul.f32 0.5, %v1180_v46  ;;  %v3730_v37 = vpop.eup %3729  ;;  %v4462_v17 = vmul.f32 0.5, %v3728_v60 }
 0x2c7   :  { %v1476_v51 = vmul.f32 0.5, %v1269_v48  ;;  %3749 = vtanh.f32 %v1475_v45  ;;  %v1337_v57 = vpop.f32.mrf.mxu0  ;;  %v3732_v20 = vpop.eup %3731  ;;  %v4464_v18 = vmul.f32 0.5, %v3730_v37 }
 0x2c8   :  { %v1426_v59 = vpop.f32.mrf.mxu1  ;;  %3751 = vtanh.f32 %v1474_v50  ;;  %v3734_v3 = vpop.eup %3733  ;;  %v4468_v11 = vadd.f32 %v1337_v57, %v4435_v9  ;;  %v4473_v38 = vmul.f32 0.5, %v3732_v20 }
 0x2c9   :  { %3753 = vtanh.f32 %v1476_v51  ;;  %v1339_v52 = vpop.f32.mrf.mxu0  ;;  %v3736_v6 = vpop.eup %3735  ;;  %v4471_v12 = vadd.f32 %v1426_v59, %v4435_v9  ;;  %v4475_v58 = vmul.f32 0.5, %v3734_v3 }
 0x2ca   :  { %v1428_v62 = vpop.f32.mrf.mxu1  ;;  %3755 = vtanh.f32 %v1458_v49  ;;  %v1340_v63 = vadd.f32 %v1339_v52, %v4435_v9  ;;  %v3738_v13 = vpop.eup %3737  ;;  %v4477_v23 = vmul.f32 0.5, %v3736_v6 }
 0x2cb   :  { %3757 = vtanh.f32 %v1460_v56  ;;  %v1343_v4 = vpop.f32.mrf.mxu0  ;;  %v1429_v55 = vadd.f32 %v1428_v62, %v4435_v9  ;;  %v4479_v24 = vmul.f32 0.5, %v3738_v13 }
 0x2cc   :  { %v1432_v8 = vpop.f32.mrf.mxu1  ;;  %v1344_v10 = vadd.f32 %v1343_v4, %v4439_v15  ;;  %v1454_v43 = vmul.f32 0.5, %v1340_v63 }
 0x2cd   :  { %v1345_v5 = vpop.f32.mrf.mxu0  ;;  %v3740_v7 = vpop.eup %3739  ;;  %v4482_v27 = vmul.f32 0.5, %v1429_v55  ;;  %v1433_v9 = vadd.f32 %v1432_v8, %v4439_v15 }
 0x2ce   :  { %v1434_v16 = vpop.f32.mrf.mxu1  ;;  %v1461_v19 = vmul.f32 0.5, %v1344_v10  ;;  %v1346_v53 = vadd.f32 %v1345_v5, %v4439_v15  ;;  %v3742_v21 = vpop.eup %3741  ;;  %3759 = vtanh.f32 %v1454_v43  ;;  %v1529_v36 = vmul.f32 0.5, %v3740_v7 }
 0x2cf   :  { %v1349_v14 = vpop.f32.mrf.mxu0  ;;  %v3744_v22 = vpop.eup %3743  ;;  %v1435_v39 = vadd.f32 %v1434_v16, %v4439_v15  ;;  %v1531_v6 = vmul.f32 0.5, %v3742_v21  ;;  %v1463_v10 = vmul.f32 0.5, %v1433_v9 }
 0x2d0   :  { %v1438_v47 = vpop.f32.mrf.mxu1  ;;  %v1462_v25 = vmul.f32 0.5, %v1346_v53  ;;  %v1350_v26 = vadd.f32 %v1349_v14, %v4445_v2  ;;  %v3746_v31 = vpop.eup %3745  ;;  %3761 = vtanh.f32 %v1461_v19  ;;  %v1530_v45 = vmul.f32 0.5, %v3744_v22 }
 0x2d1   :  { %v1439_v28 = vadd.f32 %v1438_v47, %v4445_v2  ;;  %v1351_v29 = vpop.f32.mrf.mxu0  ;;  %v1532_v51 = vmul.f32 0.5, %v3746_v31  ;;  %v1464_v13 = vmul.f32 0.5, %v1435_v39  ;;  %v1453_v19 = vmul.f32 0.5, %v4468_v11 }
 0x2d2   :  { %v1440_v30 = vpop.f32.mrf.mxu1  ;;  %v1469_v32 = vmul.f32 0.5, %v1350_v26  ;;  %v1352_v34 = vadd.f32 %v1351_v29, %v4445_v2  ;;  %3763 = vtanh.f32 %v1462_v25  ;;  %v1562_v53 = vadd.f32 0.5, %v1530_v45 }
 0x2d3   :  { %v1441_v54 = vadd.f32 %v1440_v30, %v4445_v2  ;;  %v3748_v35 = vpop.eup %3747  ;;  %v1471_v40 = vmul.f32 0.5, %v1439_v28  ;;  %v1355_v61 = vpop.f32.mrf.mxu0  ;;  %v1564_v14 = vadd.f32 0.5, %v1532_v51  ;;  %v1561_v47 = vadd.f32 0.5, %v1529_v36 }
 0x2d4   :  { %v1444_v41 = vpop.f32.mrf.mxu1  ;;  %v3750_v42 = vpop.eup %3749  ;;  %3765 = vtanh.f32 %v1469_v32  ;;  %v1470_v1 = vmul.f32 0.5, %v1352_v34  ;;  %v1356_v48 = vadd.f32 %v1355_v61, %v4451_v33  ;;  %v1537_v57 = vmul.f32 0.5, %v3748_v35  ;;  %v4531_v61 = vld [vmem:[%s4985_s0 + $0x70] sm:$0xff] }
 0x2d5   :  { %v1472_v44 = vmul.f32 0.5, %v1441_v54  ;;  %v3752_v46 = vpop.eup %3751  ;;  %3767 = vtanh.f32 %v1471_v40  ;;  %v1445_v49 = vadd.f32 %v1444_v41, %v4451_v33  ;;  %v1357_v2 = vpop.f32.mrf.mxu0  ;;  %v1539_v37 = vmul.f32 0.5, %v3750_v42 }
 0x2d6   :  { %v1446_v50 = vpop.f32.mrf.mxu1  ;;  %v3754_v56 = vpop.eup %3753  ;;  %3769 = vtanh.f32 %v1470_v1  ;;  %v1358_v15 = vadd.f32 %v1357_v2, %v4451_v33  ;;  %v1477_v52 = vmul.f32 0.5, %v1356_v48  ;;  %v1538_v4 = vmul.f32 0.5, %v3752_v46 }
 0x2d7   :  { %v1447_v59 = vadd.f32 %v1446_v50, %v4451_v33  ;;  %v3756_v60 = vpop.eup %3755  ;;  %3771 = vtanh.f32 %v1472_v44  ;;  %v1479_v62 = vmul.f32 0.5, %v1445_v49  ;;  %v1540_v8 = vmul.f32 0.5, %v3754_v56 }
 0x2d8   :  { %v3758_v20 = vpop.eup %3757  ;;  %v1478_v63 = vmul.f32 0.5, %v1358_v15  ;;  %3773 = vtanh.f32 %v1477_v52  ;;  %v1570_v43 = vadd.f32 0.5, %v1538_v4  ;;  %v1522_v5 = vmul.f32 0.5, %v3756_v60 }
 0x2d9   :  { %v1480_v3 = vmul.f32 0.5, %v1447_v59  ;;  %3775 = vtanh.f32 %v1479_v62  ;;  %v1572_v55 = vadd.f32 0.5, %v1540_v8  ;;  %v1569_v16 = vadd.f32 0.5, %v1537_v57  ;;  %v3518_v8 = vld [vmem:[%s4985_s0 + $0x78] sm:$0xff] }
 0x2da   :  { %v1571_v33 = vadd.f32 0.5, %v1539_v37  ;;  %3777 = vtanh.f32 %v1478_v63  ;;  %v1524_v7 = vmul.f32 0.5, %v3758_v20  ;;  %1623 = vmatprep.subr.mxu0 %v1570_v43  ;;  %v1563_v21 = vadd.f32 0.5, %v1531_v6 }
 0x2db   :  { %3779 = vtanh.f32 %v1480_v3  ;;  %1712 = vmatprep.subr.mxu1 %v1572_v55  ;;  %v1455_v22 = vmul.f32 0.5, %v4471_v12  ;;  %1624 = vmatpush1.msra.mxu0 %v1569_v16  ;;  %v4495_v25 = vpop.eup %3759  ;;  %v1554_v26 = vadd.f32 0.5, %v1522_v5  ;;  %v1553_v28 = vadd.f32 0.5, %v4477_v23  ;;  %v4509_v23 = vld [vmem:[%s4985_s0 + $0x60] sm:$0xff] }
 0x2dc   :  { %3781 = vtanh.f32 %v1464_v13  ;;  %1713 = vmatpush1.msra.mxu1 %v1571_v33  ;;  %1625 = vmatprep.subr.mxu0 %v1562_v53  ;;  %v1556_v9 = vadd.f32 0.5, %v1524_v7  ;;  %v1555_v29 = vadd.f32 0.5, %v4479_v24  ;;  %v1546_v30 = vadd.f32 0.5, %v4473_v38 }
 0x2dd   :  { %3783 = vtanh.f32 %v1463_v10  ;;  %1714 = vmatprep.subr.mxu1 %v1564_v14  ;;  %v4497_v11 = vpop.eup %3761  ;;  %1626 = vmatpush1.msra.mxu0 %v1561_v47  ;;  %v1548_v31 = vadd.f32 0.5, %v4475_v58  ;;  %v1545_v34 = vadd.f32 0.5, %v4462_v17  ;;  %v1547_v54 = vadd.f32 0.5, %v4464_v18  ;;  %v4520_v17 = vld [vmem:[%s4985_s0 + $0x68] sm:$0xff]  ;;  %v4570_v47 = vld [vmem:[#allocation2 + $0x60] sm:$0xff] }
 0x2de   :  { %3785 = vtanh.f32 %v4482_v27  ;;  %1715 = vmatpush1.msra.mxu1 %v1563_v21  ;;  %1627 = vmatprep.subr.mxu0 %v1554_v26  ;;  %v1525_v62 = vmul.f32 0.5, %v4497_v11  ;;  %v1518_v6 = vmul.f32 0.5, %v4495_v25 }
 0x2df   :  { %v3764_v12 = vpop.eup %3763  ;;  %3787 = vtanh.f32 %v1453_v19  ;;  %1716 = vmatprep.subr.mxu1 %v1556_v9  ;;  %1628 = vmatpush1.msra.mxu0 %v1553_v28  ;;  %v4574_v28 = vld [vmem:[#allocation2 + $0x68] sm:$0xff] }
 0x2e0   :  { %3789 = vtanh.f32 %v1455_v22  ;;  %1717 = vmatpush1.msra.mxu1 %v1555_v29  ;;  %1629 = vmatprep.subr.mxu0 %v1546_v30  ;;  %v1526_v60 = vmul.f32 0.5, %v3764_v12  ;;  %v1557_v16 = vadd.f32 0.5, %v1525_v62  ;;  %v1550_v7 = vadd.f32 0.5, %v1518_v6 }
 0x2e1   :  { %v3766_v32 = vpop.eup %3765  ;;  %1718 = vmatprep.subr.mxu1 %v1548_v31  ;;  %1630 = vmatpush1.msra.mxu0 %v1545_v34 }
 0x2e2   :  { %v3768_v24 = vpop.eup %3767  ;;  %1719 = vmatpush1.msra.mxu1 %v1547_v54  ;;  %3519 = vmatmul.mubr.msk.f32.vlgmr.msra.gmra.mxu0 %vm68_vm0, %v4509_v23  ;;  %v1533_v48 = vmul.f32 0.5, %v3766_v32  ;;  %v1558_v55 = vadd.f32 0.5, %v1526_v60 }
 0x2e3   :  { %v3770_v27 = vpop.eup %3769  ;;  %3523 = vmatmul.mubr.msk.f32.vlgmr.msra.gmra.mxu1 %vm68_vm0, %v4509_v23  ;;  %1669 = vmatprep.mubr.f32.mxu0 %v4008_v0  ;;  %v1535_v49 = vmul.f32 0.5, %v3768_v24 }
 0x2e4   :  { %v3772_v38 = vpop.eup %3771  ;;  %1758 = vmatprep.mubr.f32.mxu1 %v4008_v0  ;;  %v1534_v42 = vmul.f32 0.5, %v3770_v27  ;;  %v1565_v3 = vadd.f32 0.5, %v1533_v48  ;;  %v4586_v48 = vld [vmem:[#allocation2 + $0x78] sm:$0xff] }
 0x2e5   :  { %v3774_v18 = vpop.eup %3773  ;;  %v1536_v45 = vmul.f32 0.5, %v3772_v38  ;;  %v1567_v4 = vadd.f32 0.5, %v1535_v49 }
 0x2e6   :  { %v3776_v58 = vpop.eup %3775  ;;  %v1541_v36 = vmul.f32 0.5, %v3774_v18  ;;  %3520 = vmatmul.mubr.msk.f32.gmra.mxu0 %vm68_vm0, %v4520_v17  ;;  %v1566_v59 = vadd.f32 0.5, %v1534_v42 }
 0x2e7   :  { %v3778_v35 = vpop.eup %3777  ;;  %3524 = vmatmul.mubr.msk.f32.gmra.mxu1 %vm68_vm0, %v4520_v17  ;;  %v1543_v40 = vmul.f32 0.5, %v3776_v58  ;;  %1675 = vmatprep.mubr.f32.mxu0 %v4008_v0  ;;  %v1568_v63 = vadd.f32 0.5, %v1536_v45 }
 0x2e8   :  { %v3780_v39 = vpop.eup %3779  ;;  %1764 = vmatprep.mubr.f32.mxu1 %v4008_v0  ;;  %v1542_v41 = vmul.f32 0.5, %v3778_v35  ;;  %v1573_v51 = vadd.f32 0.5, %v1541_v36 }
 0x2e9   :  { %v3782_v1 = vpop.eup %3781  ;;  %v1544_v44 = vmul.f32 0.5, %v3780_v39  ;;  %v1575_v15 = vadd.f32 0.5, %v1543_v40 }
 0x2ea   :  { %v3784_v46 = vpop.eup %3783  ;;  %v1574_v2 = vadd.f32 0.5, %v1542_v41  ;;  %3521 = vmatmul.mubr.msk.f32.gmra.mxu0 %vm68_vm0, %v4531_v61  ;;  %v1528_v37 = vmul.f32 0.5, %v3782_v1 }
 0x2eb   :  { %v3786_v50 = vpop.eup %3785  ;;  %3525 = vmatmul.mubr.msk.f32.gmra.mxu1 %vm68_vm0, %v4531_v61  ;;  %v1576_v56 = vadd.f32 0.5, %v1544_v44  ;;  %1681 = vmatprep.mubr.f32.mxu0 %v4008_v0  ;;  %v1527_v20 = vmul.f32 0.5, %v3784_v46 }
 0x2ec   :  { %v3788_v57 = vpop.eup %3787  ;;  %1801 = vmatprep.subr.mxu0 %v1574_v2  ;;  %v1520_v10 = vmul.f32 0.5, %v3786_v50  ;;  %1770 = vmatprep.mubr.f32.mxu1 %v4008_v0  ;;  %v1560_v5 = vadd.f32 0.5, %v1528_v37 }
 0x2ed   :  { %v3790_v52 = vpop.eup %3789  ;;  %1890 = vmatprep.subr.mxu1 %v1576_v56  ;;  %1802 = vmatpush1.msra.mxu0 %v1573_v51  ;;  %v1517_v13 = vmul.f32 0.5, %v3788_v57  ;;  %v1559_v33 = vadd.f32 0.5, %v1527_v20 }
 0x2ee   :  { %1891 = vmatpush1.msra.mxu1 %v1575_v15  ;;  %1803 = vmatprep.subr.mxu0 %v1566_v59  ;;  %v1519_v43 = vmul.f32 0.5, %v3790_v52  ;;  %v1552_v19 = vadd.f32 0.5, %v1520_v10 }
 0x2ef   :  { %1892 = vmatprep.subr.mxu1 %v1568_v63  ;;  %1804 = vmatpush1.msra.mxu0 %v1565_v3  ;;  %v1549_v53 = vadd.f32 0.5, %v1517_v13 }
 0x2f0   :  { %1893 = vmatpush1.msra.mxu1 %v1567_v4  ;;  %3522 = vmatmul.mubr.msk.f32.gmra.mxu0 %vm68_vm0, %v3518_v8  ;;  %v1551_v14 = vadd.f32 0.5, %v1519_v43 }
 0x2f1   :  { %3526 = vmatmul.mubr.msk.f32.gmra.mxu1 %vm68_vm0, %v3518_v8  ;;  %1805 = vmatprep.subr.mxu0 %v1558_v55 }
 0x2f2   :  { %1894 = vmatprep.subr.mxu1 %v1560_v5  ;;  %1806 = vmatpush1.msra.mxu0 %v1557_v16 }
 0x2f3   :  { %1895 = vmatpush1.msra.mxu1 %v1559_v33  ;;  %1807 = vmatprep.subr.mxu0 %v1550_v7 }
 0x2f4   :  { %1896 = vmatprep.subr.mxu1 %v1552_v19  ;;  %1808 = vmatpush1.msra.mxu0 %v1549_v53 }
 0x2f5   :  { %1841 = vmatprep.mubr.f32.mxu0 %v4008_v0  ;;  %1897 = vmatpush1.msra.mxu1 %v1551_v14 }
 0x2f6   :  { %1930 = vmatprep.mubr.f32.mxu1 %v4008_v0  ;;  %3527 = vmatmul.mubr.msk.f32.vlgmr.msra.gmra.mxu0 %vm68_vm0, %v4509_v23 }
 0x2f7   :  { %3531 = vmatmul.mubr.msk.f32.vlgmr.msra.gmra.mxu1 %vm68_vm0, %v4509_v23  ;;  %1847 = vmatprep.mubr.f32.mxu0 %v4008_v0 }
 0x2f8   :  { %1936 = vmatprep.mubr.f32.mxu1 %v4008_v0 }
 0x2fa   :  { %3528 = vmatmul.mubr.msk.f32.gmra.mxu0 %vm68_vm0, %v4520_v17 }
 0x2fb   :  { %3532 = vmatmul.mubr.msk.f32.gmra.mxu1 %vm68_vm0, %v4520_v17  ;;  %1853 = vmatprep.mubr.f32.mxu0 %v4008_v0  ;;  %v4580_v17 = vld [vmem:[#allocation2 + $0x70] sm:$0xff] }
 0x2fc   :  { %1942 = vmatprep.mubr.f32.mxu1 %v4008_v0 }
 0x2fe   :  { %3529 = vmatmul.mubr.msk.f32.gmra.mxu0 %vm68_vm0, %v4531_v61 }
 0x2ff   :  { %3533 = vmatmul.mubr.msk.f32.gmra.mxu1 %vm68_vm0, %v4531_v61  ;;  %1859 = vmatprep.mubr.f32.mxu0 %v4008_v0 }
 0x300   :  { %1948 = vmatprep.mubr.f32.mxu1 %v4008_v0 }
 0x302   :  { %3530 = vmatmul.mubr.msk.f32.gmra.mxu0 %vm68_vm0, %v3518_v8 }
 0x303   :  { %3534 = vmatmul.mubr.msk.f32.gmra.mxu1 %vm68_vm0, %v3518_v8  ;;  %2169 = vmatprep.mubr.f32.mxu0 %v4008_v0 }
 0x304   :  { %2258 = vmatprep.mubr.f32.mxu1 %v4008_v0 }
 0x3a2   :  { %v1665_v21 = vpop.f32.mrf.mxu0 }
 0x3a3   :  { %v1754_v22 = vpop.f32.mrf.mxu1  ;;  %v1666_v25 = vadd.f32 %v1665_v21, %v4570_v47 }
 0x3a4   :  { %v1755_v26 = vadd.f32 %v1754_v22, %v4570_v47  ;;  %v1667_v9 = vpop.f32.mrf.mxu0 }
 0x3a5   :  { %v1756_v11 = vpop.f32.mrf.mxu1  ;;  %v1668_v29 = vadd.f32 %v1667_v9, %v4570_v47  ;;  %v1955_v30 = vmul.f32 0.5, %v1666_v25 }
 0x3a6   :  { %v1757_v12 = vadd.f32 %v1756_v11, %v4570_v47  ;;  %v1671_v31 = vpop.f32.mrf.mxu0  ;;  %v1957_v34 = vmul.f32 0.5, %v1755_v26 }
 0x3a7   :  { %v1760_v32 = vpop.f32.mrf.mxu1  ;;  %v1672_v54 = vadd.f32 %v1671_v31, %v4574_v28  ;;  %v1956_v23 = vmul.f32 0.5, %v1668_v29  ;;  %3791 = vtanh.f32 %v1955_v30 }
 0x3a8   :  { %v1761_v24 = vadd.f32 %v1760_v32, %v4574_v28  ;;  %v1673_v27 = vpop.f32.mrf.mxu0  ;;  %v1958_v18 = vmul.f32 0.5, %v1757_v12  ;;  %3793 = vtanh.f32 %v1957_v34 }
 0x3a9   :  { %v1762_v38 = vpop.f32.mrf.mxu1  ;;  %v1963_v58 = vmul.f32 0.5, %v1672_v54  ;;  %3795 = vtanh.f32 %v1956_v23  ;;  %v1674_v56 = vadd.f32 %v1673_v27, %v4574_v28 }
 0x3aa   :  { %v1677_v35 = vpop.f32.mrf.mxu0  ;;  %v1965_v39 = vmul.f32 0.5, %v1761_v24  ;;  %3797 = vtanh.f32 %v1958_v18  ;;  %v1763_v59 = vadd.f32 %v1762_v38, %v4574_v28 }
 0x3ab   :  { %v1766_v36 = vpop.f32.mrf.mxu1  ;;  %v1678_v40 = vadd.f32 %v1677_v35, %v4580_v17  ;;  %3799 = vtanh.f32 %v1963_v58  ;;  %v1964_v3 = vmul.f32 0.5, %v1674_v56 }
 0x3ac   :  { %v1767_v61 = vadd.f32 %v1766_v36, %v4580_v17  ;;  %v1679_v41 = vpop.f32.mrf.mxu0  ;;  %3801 = vtanh.f32 %v1965_v39  ;;  %v1966_v6 = vmul.f32 0.5, %v1763_v59 }
 0x3ad   :  { %v1768_v42 = vpop.f32.mrf.mxu1  ;;  %v1971_v1 = vmul.f32 0.5, %v1678_v40  ;;  %v1680_v44 = vadd.f32 %v1679_v41, %v4580_v17 }
 0x3ae   :  { %v1769_v45 = vadd.f32 %v1768_v42, %v4580_v17  ;;  %v1973_v46 = vmul.f32 0.5, %v1767_v61 }
 0x3af   :  { %v1972_v49 = vmul.f32 0.5, %v1680_v44  ;;  %3803 = vtanh.f32 %v1971_v1 }
 0x3b0   :  { %v1974_v2 = vmul.f32 0.5, %v1769_v45  ;;  %v1683_v50 = vpop.f32.mrf.mxu0  ;;  %3805 = vtanh.f32 %v1973_v46 }
 0x3b1   :  { %v1772_v51 = vpop.f32.mrf.mxu1  ;;  %v1684_v57 = vadd.f32 %v1683_v50, %v4586_v48  ;;  %3807 = vtanh.f32 %v1972_v49 }
 0x3b2   :  { %v1773_v15 = vadd.f32 %v1772_v51, %v4586_v48  ;;  %v1685_v60 = vpop.f32.mrf.mxu0  ;;  %3809 = vtanh.f32 %v1974_v2 }
 0x3b3   :  { %v1774_v37 = vpop.f32.mrf.mxu1  ;;  %v1979_v52 = vmul.f32 0.5, %v1684_v57  ;;  %v1686_v20 = vadd.f32 %v1685_v60, %v4586_v48 }
 0x3b4   :  { %v1981_v62 = vmul.f32 0.5, %v1773_v15  ;;  %v1775_v63 = vadd.f32 %v1774_v37, %v4586_v48  ;;  %v3792_v43 = vpop.eup %3791 }
 0x3b5   :  { %3811 = vtanh.f32 %v1979_v52  ;;  %v1980_v4 = vmul.f32 0.5, %v1686_v20  ;;  %v3794_v55 = vpop.eup %3793  ;;  %v4597_v30 = vmul.f32 0.5, %v3792_v43 }
 0x3b6   :  { %v1982_v8 = vmul.f32 0.5, %v1775_v63  ;;  %3813 = vtanh.f32 %v1981_v62  ;;  %v1843_v10 = vpop.f32.mrf.mxu0  ;;  %v3796_v33 = vpop.eup %3795  ;;  %v4599_v31 = vmul.f32 0.5, %v3794_v55 }
 0x3b7   :  { %v1932_v13 = vpop.f32.mrf.mxu1  ;;  %3815 = vtanh.f32 %v1980_v4  ;;  %v3798_v19 = vpop.eup %3797  ;;  %v4603_v23 = vadd.f32 %v1843_v10, %v4570_v47  ;;  %v4608_v18 = vmul.f32 0.5, %v3796_v33 }
 0x3b8   :  { %3817 = vtanh.f32 %v1982_v8  ;;  %v1845_v5 = vpop.f32.mrf.mxu0  ;;  %v3800_v21 = vpop.eup %3799  ;;  %v4606_v24 = vadd.f32 %v1932_v13, %v4570_v47  ;;  %v4610_v58 = vmul.f32 0.5, %v3798_v19 }
 0x3b9   :  { %v1934_v16 = vpop.f32.mrf.mxu1  ;;  %3819 = vtanh.f32 %v1964_v3  ;;  %v1846_v7 = vadd.f32 %v1845_v5, %v4570_v47  ;;  %v3802_v25 = vpop.eup %3801  ;;  %v4612_v36 = vmul.f32 0.5, %v3800_v21 }
 0x3ba   :  { %3821 = vtanh.f32 %v1966_v6  ;;  %v1849_v53 = vpop.f32.mrf.mxu0  ;;  %v1935_v9 = vadd.f32 %v1934_v16, %v4570_v47  ;;  %v4614_v39 = vmul.f32 0.5, %v3802_v25 }
 0x3bb   :  { %v1938_v14 = vpop.f32.mrf.mxu1  ;;  %v1850_v22 = vadd.f32 %v1849_v53, %v4574_v28  ;;  %v1960_v26 = vmul.f32 0.5, %v1846_v7 }
 0x3bc   :  { %v1851_v11 = vpop.f32.mrf.mxu0  ;;  %v3804_v12 = vpop.eup %3803  ;;  %v4617_v41 = vmul.f32 0.5, %v1935_v9  ;;  %v1939_v47 = vadd.f32 %v1938_v14, %v4574_v28 }
 0x3bd   :  { %v1940_v29 = vpop.f32.mrf.mxu1  ;;  %v1967_v32 = vmul.f32 0.5, %v1850_v22  ;;  %v1852_v34 = vadd.f32 %v1851_v11, %v4574_v28  ;;  %v3806_v54 = vpop.eup %3805  ;;  %3823 = vtanh.f32 %v1960_v26  ;;  %v2035_v51 = vmul.f32 0.5, %v3804_v12 }
 0x3be   :  { %v1855_v27 = vpop.f32.mrf.mxu0  ;;  %v3808_v35 = vpop.eup %3807  ;;  %v1941_v56 = vadd.f32 %v1940_v29, %v4574_v28  ;;  %v2037_v21 = vmul.f32 0.5, %v3806_v54  ;;  %v1969_v22 = vmul.f32 0.5, %v1939_v47 }
 0x3bf   :  { %v1944_v38 = vpop.f32.mrf.mxu1  ;;  %v1968_v40 = vmul.f32 0.5, %v1852_v34  ;;  %v1856_v61 = vadd.f32 %v1855_v27, %v4580_v17  ;;  %v3810_v45 = vpop.eup %3809  ;;  %3825 = vtanh.f32 %v1967_v32  ;;  %v2036_v62 = vmul.f32 0.5, %v3808_v35 }
 0x3c0   :  { %v1945_v42 = vadd.f32 %v1944_v38, %v4580_v17  ;;  %v1857_v1 = vpop.f32.mrf.mxu0  ;;  %v2038_v8 = vmul.f32 0.5, %v3810_v45  ;;  %v1970_v25 = vmul.f32 0.5, %v1941_v56  ;;  %v1959_v32 = vmul.f32 0.5, %v4603_v23 }
 0x3c1   :  { %v1946_v44 = vpop.f32.mrf.mxu1  ;;  %v1975_v46 = vmul.f32 0.5, %v1856_v61  ;;  %v1858_v49 = vadd.f32 %v1857_v1, %v4580_v17  ;;  %3827 = vtanh.f32 %v1968_v40  ;;  %v2068_v34 = vadd.f32 0.5, %v2036_v62 }
 0x3c2   :  { %v1947_v2 = vadd.f32 %v1946_v44, %v4580_v17  ;;  %v3812_v50 = vpop.eup %3811  ;;  %v1977_v57 = vmul.f32 0.5, %v1945_v42  ;;  %v1861_v15 = vpop.f32.mrf.mxu0  ;;  %v2070_v27 = vadd.f32 0.5, %v2038_v8  ;;  %v2067_v38 = vadd.f32 0.5, %v2035_v51 }
 0x3c3   :  { %v1950_v59 = vpop.f32.mrf.mxu1  ;;  %v3814_v60 = vpop.eup %3813  ;;  %3829 = vtanh.f32 %v1975_v46  ;;  %v1976_v37 = vmul.f32 0.5, %v1858_v49  ;;  %v1862_v63 = vadd.f32 %v1861_v15, %v4586_v48  ;;  %v2043_v10 = vmul.f32 0.5, %v3812_v50  ;;  %v4666_v15 = vld [vmem:[%s4985_s0 + $0x90] sm:$0xff] }
 0x3c4   :  { %v1978_v52 = vmul.f32 0.5, %v1947_v2  ;;  %v3816_v20 = vpop.eup %3815  ;;  %3831 = vtanh.f32 %v1977_v57  ;;  %v1951_v3 = vadd.f32 %v1950_v59, %v4586_v48  ;;  %v1863_v17 = vpop.f32.mrf.mxu0  ;;  %v2045_v55 = vmul.f32 0.5, %v3814_v60 }
 0x3c5   :  { %v1952_v4 = vpop.f32.mrf.mxu1  ;;  %v3818_v6 = vpop.eup %3817  ;;  %3833 = vtanh.f32 %v1976_v37  ;;  %v1864_v28 = vadd.f32 %v1863_v17, %v4586_v48  ;;  %v1983_v5 = vmul.f32 0.5, %v1862_v63  ;;  %v2044_v53 = vmul.f32 0.5, %v3816_v20 }
 0x3c6   :  { %v1953_v13 = vadd.f32 %v1952_v4, %v4586_v48  ;;  %v3820_v43 = vpop.eup %3819  ;;  %3835 = vtanh.f32 %v1978_v52  ;;  %v1985_v16 = vmul.f32 0.5, %v1951_v3  ;;  %v2046_v14 = vmul.f32 0.5, %v3818_v6 }
 0x3c7   :  { %v3822_v33 = vpop.eup %3821  ;;  %v1984_v7 = vmul.f32 0.5, %v1864_v28  ;;  %3837 = vtanh.f32 %v1983_v5  ;;  %v2076_v26 = vadd.f32 0.5, %v2044_v53  ;;  %v2028_v11 = vmul.f32 0.5, %v3820_v43 }
 0x3c8   :  { %v1986_v19 = vmul.f32 0.5, %v1953_v13  ;;  %3839 = vtanh.f32 %v1985_v16  ;;  %v2078_v9 = vadd.f32 0.5, %v2046_v14  ;;  %v2075_v29 = vadd.f32 0.5, %v2043_v10  ;;  %v3538_v14 = vld [vmem:[%s4985_s0 + $0x98] sm:$0xff] }
 0x3c9   :  { %v2077_v48 = vadd.f32 0.5, %v2045_v55  ;;  %3841 = vtanh.f32 %v1984_v7  ;;  %v2030_v12 = vmul.f32 0.5, %v3822_v33  ;;  %2129 = vmatprep.subr.mxu0 %v2076_v26  ;;  %v2069_v54 = vadd.f32 0.5, %v2037_v21 }
 0x3ca   :  { %3843 = vtanh.f32 %v1986_v19  ;;  %2218 = vmatprep.subr.mxu1 %v2078_v9  ;;  %v1961_v35 = vmul.f32 0.5, %v4606_v24  ;;  %2130 = vmatpush1.msra.mxu0 %v2075_v29  ;;  %v4630_v40 = vpop.eup %3823  ;;  %v2060_v61 = vadd.f32 0.5, %v2028_v11  ;;  %v2059_v42 = vadd.f32 0.5, %v4612_v36  ;;  %v4644_v36 = vld [vmem:[%s4985_s0 + $0x80] sm:$0xff] }
 0x3cb   :  { %3845 = vtanh.f32 %v1970_v25  ;;  %2219 = vmatpush1.msra.mxu1 %v2077_v48  ;;  %2131 = vmatprep.subr.mxu0 %v2068_v34  ;;  %v2062_v47 = vadd.f32 0.5, %v2030_v12  ;;  %v2061_v1 = vadd.f32 0.5, %v4614_v39  ;;  %v2052_v44 = vadd.f32 0.5, %v4608_v18 }
 0x3cc   :  { %3847 = vtanh.f32 %v1969_v22  ;;  %2220 = vmatprep.subr.mxu1 %v2070_v27  ;;  %v4632_v23 = vpop.eup %3825  ;;  %2132 = vmatpush1.msra.mxu0 %v2067_v38  ;;  %v2054_v45 = vadd.f32 0.5, %v4610_v58  ;;  %v2051_v49 = vadd.f32 0.5, %v4597_v30  ;;  %v2053_v2 = vadd.f32 0.5, %v4599_v31  ;;  %v4655_v30 = vld [vmem:[%s4985_s0 + $0x88] sm:$0xff]  ;;  %v4705_v38 = vld [vmem:[#allocation2 + $0x80] sm:$0xff] }
 0x3cd   :  { %3849 = vtanh.f32 %v4617_v41  ;;  %2221 = vmatpush1.msra.mxu1 %v2069_v54  ;;  %2133 = vmatprep.subr.mxu0 %v2060_v61  ;;  %v2031_v16 = vmul.f32 0.5, %v4632_v23  ;;  %v2024_v21 = vmul.f32 0.5, %v4630_v40 }
 0x3ce   :  { %v3828_v24 = vpop.eup %3827  ;;  %3851 = vtanh.f32 %v1959_v32  ;;  %2222 = vmatprep.subr.mxu1 %v2062_v47  ;;  %2134 = vmatpush1.msra.mxu0 %v2059_v42  ;;  %v4709_v42 = vld [vmem:[#allocation2 + $0x88] sm:$0xff] }
 0x3cf   :  { %3853 = vtanh.f32 %v1961_v35  ;;  %2223 = vmatpush1.msra.mxu1 %v2061_v1  ;;  %2135 = vmatprep.subr.mxu0 %v2052_v44  ;;  %v2032_v43 = vmul.f32 0.5, %v3828_v24  ;;  %v2063_v29 = vadd.f32 0.5, %v2031_v16  ;;  %v2056_v12 = vadd.f32 0.5, %v2024_v21 }
 0x3d0   :  { %v3830_v46 = vpop.eup %3829  ;;  %2224 = vmatprep.subr.mxu1 %v2054_v45  ;;  %2136 = vmatpush1.msra.mxu0 %v2051_v49 }
 0x3d1   :  { %v3832_v39 = vpop.eup %3831  ;;  %2225 = vmatpush1.msra.mxu1 %v2053_v2  ;;  %3539 = vmatmul.mubr.msk.f32.vlgmr.msra.gmra.mxu0 %vm68_vm0, %v4644_v36  ;;  %v2039_v63 = vmul.f32 0.5, %v3830_v46  ;;  %v2064_v9 = vadd.f32 0.5, %v2032_v43 }
 0x3d2   :  { %v3834_v41 = vpop.eup %3833  ;;  %3543 = vmatmul.mubr.msk.f32.vlgmr.msra.gmra.mxu1 %vm68_vm0, %v4644_v36  ;;  %2175 = vmatprep.mubr.f32.mxu0 %v4008_v0  ;;  %v2041_v3 = vmul.f32 0.5, %v3832_v39 }
 0x3d3   :  { %v3836_v18 = vpop.eup %3835  ;;  %2264 = vmatprep.mubr.f32.mxu1 %v4008_v0  ;;  %v2040_v60 = vmul.f32 0.5, %v3834_v41  ;;  %v2071_v19 = vadd.f32 0.5, %v2039_v63  ;;  %v4721_v63 = vld [vmem:[#allocation2 + $0x98] sm:$0xff] }
 0x3d4   :  { %v3838_v31 = vpop.eup %3837  ;;  %v2042_v62 = vmul.f32 0.5, %v3836_v18  ;;  %v2073_v53 = vadd.f32 0.5, %v2041_v3 }
 0x3d5   :  { %v3840_v58 = vpop.eup %3839  ;;  %v2047_v51 = vmul.f32 0.5, %v3838_v31  ;;  %3540 = vmatmul.mubr.msk.f32.gmra.mxu0 %vm68_vm0, %v4655_v30  ;;  %v2072_v13 = vadd.f32 0.5, %v2040_v60 }
 0x3d6   :  { %v3842_v50 = vpop.eup %3841  ;;  %3544 = vmatmul.mubr.msk.f32.gmra.mxu1 %vm68_vm0, %v4655_v30  ;;  %v2049_v57 = vmul.f32 0.5, %v3840_v58  ;;  %2181 = vmatprep.mubr.f32.mxu0 %v4008_v0  ;;  %v2074_v7 = vadd.f32 0.5, %v2042_v62 }
 0x3d7   :  { %v3844_v56 = vpop.eup %3843  ;;  %2270 = vmatprep.mubr.f32.mxu1 %v4008_v0  ;;  %v2048_v59 = vmul.f32 0.5, %v3842_v50  ;;  %v2079_v8 = vadd.f32 0.5, %v2047_v51 }
 0x3d8   :  { %v3846_v37 = vpop.eup %3845  ;;  %v2050_v52 = vmul.f32 0.5, %v3844_v56  ;;  %v2081_v28 = vadd.f32 0.5, %v2049_v57 }
 0x3d9   :  { %v3848_v20 = vpop.eup %3847  ;;  %v2080_v17 = vadd.f32 0.5, %v2048_v59  ;;  %3541 = vmatmul.mubr.msk.f32.gmra.mxu0 %vm68_vm0, %v4666_v15  ;;  %v2034_v55 = vmul.f32 0.5, %v3846_v37 }
 0x3da   :  { %v3850_v4 = vpop.eup %3849  ;;  %3545 = vmatmul.mubr.msk.f32.gmra.mxu1 %vm68_vm0, %v4666_v15  ;;  %v2082_v6 = vadd.f32 0.5, %v2050_v52  ;;  %2187 = vmatprep.mubr.f32.mxu0 %v4008_v0  ;;  %v2033_v33 = vmul.f32 0.5, %v3848_v20 }
 0x3db   :  { %v3852_v10 = vpop.eup %3851  ;;  %2307 = vmatprep.subr.mxu0 %v2080_v17  ;;  %v2026_v22 = vmul.f32 0.5, %v3850_v4  ;;  %2276 = vmatprep.mubr.f32.mxu1 %v4008_v0  ;;  %v2066_v11 = vadd.f32 0.5, %v2034_v55 }
 0x3dc   :  { %v3854_v5 = vpop.eup %3853  ;;  %2396 = vmatprep.subr.mxu1 %v2082_v6  ;;  %2308 = vmatpush1.msra.mxu0 %v2079_v8  ;;  %v2023_v25 = vmul.f32 0.5, %v3852_v10  ;;  %v2065_v48 = vadd.f32 0.5, %v2033_v33 }
 0x3dd   :  { %2397 = vmatpush1.msra.mxu1 %v2081_v28  ;;  %2309 = vmatprep.subr.mxu0 %v2072_v13  ;;  %v2025_v26 = vmul.f32 0.5, %v3854_v5  ;;  %v2058_v32 = vadd.f32 0.5, %v2026_v22 }
 0x3de   :  { %2398 = vmatprep.subr.mxu1 %v2074_v7  ;;  %2310 = vmatpush1.msra.mxu0 %v2071_v19  ;;  %v2055_v34 = vadd.f32 0.5, %v2023_v25 }
 0x3df   :  { %2399 = vmatpush1.msra.mxu1 %v2073_v53  ;;  %3542 = vmatmul.mubr.msk.f32.gmra.mxu0 %vm68_vm0, %v3538_v14  ;;  %v2057_v27 = vadd.f32 0.5, %v2025_v26 }
 0x3e0   :  { %3546 = vmatmul.mubr.msk.f32.gmra.mxu1 %vm68_vm0, %v3538_v14  ;;  %2311 = vmatprep.subr.mxu0 %v2064_v9 }
 0x3e1   :  { %2400 = vmatprep.subr.mxu1 %v2066_v11  ;;  %2312 = vmatpush1.msra.mxu0 %v2063_v29 }
 0x3e2   :  { %2401 = vmatpush1.msra.mxu1 %v2065_v48  ;;  %2313 = vmatprep.subr.mxu0 %v2056_v12 }
 0x3e3   :  { %2402 = vmatprep.subr.mxu1 %v2058_v32  ;;  %2314 = vmatpush1.msra.mxu0 %v2055_v34 }
 0x3e4   :  { %2347 = vmatprep.mubr.f32.mxu0 %v4008_v0  ;;  %2403 = vmatpush1.msra.mxu1 %v2057_v27 }
 0x3e5   :  { %2436 = vmatprep.mubr.f32.mxu1 %v4008_v0  ;;  %3547 = vmatmul.mubr.msk.f32.vlgmr.msra.gmra.mxu0 %vm68_vm0, %v4644_v36 }
 0x3e6   :  { %3551 = vmatmul.mubr.msk.f32.vlgmr.msra.gmra.mxu1 %vm68_vm0, %v4644_v36  ;;  %2353 = vmatprep.mubr.f32.mxu0 %v4008_v0 }
 0x3e7   :  { %2442 = vmatprep.mubr.f32.mxu1 %v4008_v0 }
 0x3e9   :  { %3548 = vmatmul.mubr.msk.f32.gmra.mxu0 %vm68_vm0, %v4655_v30 }
 0x3ea   :  { %3552 = vmatmul.mubr.msk.f32.gmra.mxu1 %vm68_vm0, %v4655_v30  ;;  %2359 = vmatprep.mubr.f32.mxu0 %v4008_v0  ;;  %v4715_v30 = vld [vmem:[#allocation2 + $0x90] sm:$0xff] }
 0x3eb   :  { %2448 = vmatprep.mubr.f32.mxu1 %v4008_v0 }
 0x3ed   :  { %3549 = vmatmul.mubr.msk.f32.gmra.mxu0 %vm68_vm0, %v4666_v15 }
 0x3ee   :  { %3553 = vmatmul.mubr.msk.f32.gmra.mxu1 %vm68_vm0, %v4666_v15  ;;  %2365 = vmatprep.mubr.f32.mxu0 %v4008_v0 }
 0x3ef   :  { %2454 = vmatprep.mubr.f32.mxu1 %v4008_v0 }
 0x3f1   :  { %3550 = vmatmul.mubr.msk.f32.gmra.mxu0 %vm68_vm0, %v3538_v14 }
 0x3f2   :  { %3554 = vmatmul.mubr.msk.f32.gmra.mxu1 %vm68_vm0, %v3538_v14  ;;  %2675 = vmatprep.mubr.f32.mxu0 %v4008_v0 }
 0x3f3   :  { %2764 = vmatprep.mubr.f32.mxu1 %v4008_v0 }
 0x491   :  { %v2171_v54 = vpop.f32.mrf.mxu0 }
 0x492   :  { %v2260_v35 = vpop.f32.mrf.mxu1  ;;  %v2172_v40 = vadd.f32 %v2171_v54, %v4705_v38 }
 0x493   :  { %v2261_v61 = vadd.f32 %v2260_v35, %v4705_v38  ;;  %v2173_v47 = vpop.f32.mrf.mxu0 }
 0x494   :  { %v2262_v23 = vpop.f32.mrf.mxu1  ;;  %v2174_v1 = vadd.f32 %v2173_v47, %v4705_v38  ;;  %v2461_v44 = vmul.f32 0.5, %v2172_v40 }
 0x495   :  { %v2263_v24 = vadd.f32 %v2262_v23, %v4705_v38  ;;  %v2177_v45 = vpop.f32.mrf.mxu0  ;;  %v2463_v49 = vmul.f32 0.5, %v2261_v61 }
 0x496   :  { %v2266_v46 = vpop.f32.mrf.mxu1  ;;  %v2178_v2 = vadd.f32 %v2177_v45, %v4709_v42  ;;  %v2462_v36 = vmul.f32 0.5, %v2174_v1  ;;  %3855 = vtanh.f32 %v2461_v44 }
 0x497   :  { %v2267_v39 = vadd.f32 %v2266_v46, %v4709_v42  ;;  %v2179_v41 = vpop.f32.mrf.mxu0  ;;  %v2464_v31 = vmul.f32 0.5, %v2263_v24  ;;  %3857 = vtanh.f32 %v2463_v49 }
 0x498   :  { %v2268_v18 = vpop.f32.mrf.mxu1  ;;  %v2469_v58 = vmul.f32 0.5, %v2178_v2  ;;  %3859 = vtanh.f32 %v2462_v36  ;;  %v2180_v6 = vadd.f32 %v2179_v41, %v4709_v42 }
 0x499   :  { %v2183_v50 = vpop.f32.mrf.mxu0  ;;  %v2471_v56 = vmul.f32 0.5, %v2267_v39  ;;  %3861 = vtanh.f32 %v2464_v31  ;;  %v2269_v13 = vadd.f32 %v2268_v18, %v4709_v42 }
 0x49a   :  { %v2272_v51 = vpop.f32.mrf.mxu1  ;;  %v2184_v57 = vadd.f32 %v2183_v50, %v4715_v30  ;;  %3863 = vtanh.f32 %v2469_v58  ;;  %v2470_v19 = vmul.f32 0.5, %v2180_v6 }
 0x49b   :  { %v2273_v15 = vadd.f32 %v2272_v51, %v4715_v30  ;;  %v2185_v59 = vpop.f32.mrf.mxu0  ;;  %3865 = vtanh.f32 %v2471_v56  ;;  %v2472_v21 = vmul.f32 0.5, %v2269_v13 }
 0x49c   :  { %v2274_v60 = vpop.f32.mrf.mxu1  ;;  %v2477_v37 = vmul.f32 0.5, %v2184_v57  ;;  %v2186_v52 = vadd.f32 %v2185_v59, %v4715_v30 }
 0x49d   :  { %v2275_v62 = vadd.f32 %v2274_v60, %v4715_v30  ;;  %v2479_v20 = vmul.f32 0.5, %v2273_v15 }
 0x49e   :  { %v2478_v3 = vmul.f32 0.5, %v2186_v52  ;;  %3867 = vtanh.f32 %v2477_v37 }
 0x49f   :  { %v2480_v17 = vmul.f32 0.5, %v2275_v62  ;;  %v2189_v4 = vpop.f32.mrf.mxu0  ;;  %3869 = vtanh.f32 %v2479_v20 }
 0x4a0   :  { %v2278_v8 = vpop.f32.mrf.mxu1  ;;  %v2190_v10 = vadd.f32 %v2189_v4, %v4721_v63  ;;  %3871 = vtanh.f32 %v2478_v3 }
 0x4a1   :  { %v2279_v28 = vadd.f32 %v2278_v8, %v4721_v63  ;;  %v2191_v43 = vpop.f32.mrf.mxu0  ;;  %3873 = vtanh.f32 %v2480_v17 }
 0x4a2   :  { %v2280_v55 = vpop.f32.mrf.mxu1  ;;  %v2485_v5 = vmul.f32 0.5, %v2190_v10  ;;  %v2192_v33 = vadd.f32 %v2191_v43, %v4721_v63 }
 0x4a3   :  { %v2487_v16 = vmul.f32 0.5, %v2279_v28  ;;  %v2281_v7 = vadd.f32 %v2280_v55, %v4721_v63  ;;  %v3856_v26 = vpop.eup %3855 }
 0x4a4   :  { %3875 = vtanh.f32 %v2485_v5  ;;  %v2486_v53 = vmul.f32 0.5, %v2192_v33  ;;  %v3858_v9 = vpop.eup %3857  ;;  %v4732_v44 = vmul.f32 0.5, %v3856_v26 }
 0x4a5   :  { %v2488_v14 = vmul.f32 0.5, %v2281_v7  ;;  %3877 = vtanh.f32 %v2487_v16  ;;  %v2349_v22 = vpop.f32.mrf.mxu0  ;;  %v3860_v48 = vpop.eup %3859  ;;  %v4734_v45 = vmul.f32 0.5, %v3858_v9 }
 0x4a6   :  { %v2438_v25 = vpop.f32.mrf.mxu1  ;;  %3879 = vtanh.f32 %v2486_v53  ;;  %v3862_v32 = vpop.eup %3861  ;;  %v4738_v36 = vadd.f32 %v2349_v22, %v4705_v38  ;;  %v4743_v31 = vmul.f32 0.5, %v3860_v48 }
 0x4a7   :  { %3881 = vtanh.f32 %v2488_v14  ;;  %v2351_v11 = vpop.f32.mrf.mxu0  ;;  %v3864_v54 = vpop.eup %3863  ;;  %v4741_v39 = vadd.f32 %v2438_v25, %v4705_v38  ;;  %v4745_v58 = vmul.f32 0.5, %v3862_v32 }
 0x4a8   :  { %v2440_v29 = vpop.f32.mrf.mxu1  ;;  %3883 = vtanh.f32 %v2470_v19  ;;  %v2352_v12 = vadd.f32 %v2351_v11, %v4705_v38  ;;  %v3866_v40 = vpop.eup %3865  ;;  %v4747_v51 = vmul.f32 0.5, %v3864_v54 }
 0x4a9   :  { %3885 = vtanh.f32 %v2472_v21  ;;  %v2355_v34 = vpop.f32.mrf.mxu0  ;;  %v2441_v47 = vadd.f32 %v2440_v29, %v4705_v38  ;;  %v4749_v56 = vmul.f32 0.5, %v3866_v40 }
 0x4aa   :  { %v2444_v27 = vpop.f32.mrf.mxu1  ;;  %v2356_v35 = vadd.f32 %v2355_v34, %v4709_v42  ;;  %v2466_v61 = vmul.f32 0.5, %v2352_v12 }
 0x4ab   :  { %v2357_v23 = vpop.f32.mrf.mxu0  ;;  %v3868_v24 = vpop.eup %3867  ;;  %v4752_v59 = vmul.f32 0.5, %v2441_v47  ;;  %v2445_v38 = vadd.f32 %v2444_v27, %v4709_v42 }
 0x4ac   :  { %v2446_v1 = vpop.f32.mrf.mxu1  ;;  %v2473_v46 = vmul.f32 0.5, %v2356_v35  ;;  %v2358_v49 = vadd.f32 %v2357_v23, %v4709_v42  ;;  %v3870_v2 = vpop.eup %3869  ;;  %3887 = vtanh.f32 %v2466_v61  ;;  %v2541_v8 = vmul.f32 0.5, %v3868_v24 }
 0x4ad   :  { %v2361_v41 = vpop.f32.mrf.mxu0  ;;  %v3872_v50 = vpop.eup %3871  ;;  %v2447_v6 = vadd.f32 %v2446_v1, %v4709_v42  ;;  %v2543_v54 = vmul.f32 0.5, %v3870_v2  ;;  %v2475_v35 = vmul.f32 0.5, %v2445_v38 }
 0x4ae   :  { %v2450_v18 = vpop.f32.mrf.mxu1  ;;  %v2474_v57 = vmul.f32 0.5, %v2358_v49  ;;  %v2362_v15 = vadd.f32 %v2361_v41, %v4715_v30  ;;  %v3874_v62 = vpop.eup %3873  ;;  %3889 = vtanh.f32 %v2473_v46  ;;  %v2542_v16 = vmul.f32 0.5, %v3872_v50 }
 0x4af   :  { %v2451_v60 = vadd.f32 %v2450_v18, %v4715_v30  ;;  %v2363_v37 = vpop.f32.mrf.mxu0  ;;  %v2544_v14 = vmul.f32 0.5, %v3874_v62  ;;  %v2476_v40 = vmul.f32 0.5, %v2447_v6  ;;  %v2465_v46 = vmul.f32 0.5, %v4738_v36 }
 0x4b0   :  { %v2452_v52 = vpop.f32.mrf.mxu1  ;;  %v2481_v20 = vmul.f32 0.5, %v2362_v15  ;;  %v2364_v3 = vadd.f32 %v2363_v37, %v4715_v30  ;;  %3891 = vtanh.f32 %v2474_v57  ;;  %v2574_v49 = vadd.f32 0.5, %v2542_v16 }
 0x4b1   :  { %v2453_v17 = vadd.f32 %v2452_v52, %v4715_v30  ;;  %v3876_v4 = vpop.eup %3875  ;;  %v2483_v10 = vmul.f32 0.5, %v2451_v60  ;;  %v2367_v28 = vpop.f32.mrf.mxu0  ;;  %v2576_v41 = vadd.f32 0.5, %v2544_v14  ;;  %v2573_v18 = vadd.f32 0.5, %v2541_v8 }
 0x4b2   :  { %v2456_v13 = vpop.f32.mrf.mxu1  ;;  %v3878_v43 = vpop.eup %3877  ;;  %3893 = vtanh.f32 %v2481_v20  ;;  %v2482_v55 = vmul.f32 0.5, %v2364_v3  ;;  %v2368_v7 = vadd.f32 %v2367_v28, %v4721_v63  ;;  %v2549_v22 = vmul.f32 0.5, %v3876_v4  ;;  %v4801_v28 = vld [vmem:[%s4985_s0 + $0xb0] sm:$0xff] }
 0x4b3   :  { %v2484_v5 = vmul.f32 0.5, %v2453_v17  ;;  %v3880_v33 = vpop.eup %3879  ;;  %3895 = vtanh.f32 %v2483_v10  ;;  %v2457_v19 = vadd.f32 %v2456_v13, %v4721_v63  ;;  %v2369_v30 = vpop.f32.mrf.mxu0  ;;  %v2551_v9 = vmul.f32 0.5, %v3878_v43 }
 0x4b4   :  { %v2458_v53 = vpop.f32.mrf.mxu1  ;;  %v3882_v21 = vpop.eup %3881  ;;  %3897 = vtanh.f32 %v2482_v55  ;;  %v2370_v42 = vadd.f32 %v2369_v30, %v4721_v63  ;;  %v2489_v11 = vmul.f32 0.5, %v2368_v7  ;;  %v2550_v34 = vmul.f32 0.5, %v3880_v33 }
 0x4b5   :  { %v2459_v25 = vadd.f32 %v2458_v53, %v4721_v63  ;;  %v3884_v26 = vpop.eup %3883  ;;  %3899 = vtanh.f32 %v2484_v5  ;;  %v2491_v29 = vmul.f32 0.5, %v2457_v19  ;;  %v2552_v27 = vmul.f32 0.5, %v3882_v21 }
 0x4b6   :  { %v3886_v48 = vpop.eup %3885  ;;  %v2490_v12 = vmul.f32 0.5, %v2370_v42  ;;  %3901 = vtanh.f32 %v2489_v11  ;;  %v2582_v61 = vadd.f32 0.5, %v2550_v34  ;;  %v2534_v23 = vmul.f32 0.5, %v3884_v26 }
 0x4b7   :  { %v2492_v32 = vmul.f32 0.5, %v2459_v25  ;;  %3903 = vtanh.f32 %v2491_v29  ;;  %v2584_v47 = vadd.f32 0.5, %v2552_v27  ;;  %v2581_v1 = vadd.f32 0.5, %v2549_v22  ;;  %v3558_v27 = vld [vmem:[%s4985_s0 + $0xb8] sm:$0xff] }
 0x4b8   :  { %v2583_v63 = vadd.f32 0.5, %v2551_v9  ;;  %3905 = vtanh.f32 %v2490_v12  ;;  %v2536_v24 = vmul.f32 0.5, %v3886_v48  ;;  %2635 = vmatprep.subr.mxu0 %v2582_v61  ;;  %v2575_v2 = vadd.f32 0.5, %v2543_v54 }
 0x4b9   :  { %3907 = vtanh.f32 %v2492_v32  ;;  %2724 = vmatprep.subr.mxu1 %v2584_v47  ;;  %v2467_v50 = vmul.f32 0.5, %v4741_v39  ;;  %2636 = vmatpush1.msra.mxu0 %v2581_v1  ;;  %v4765_v57 = vpop.eup %3887  ;;  %v2566_v15 = vadd.f32 0.5, %v2534_v23  ;;  %v2565_v60 = vadd.f32 0.5, %v4747_v51  ;;  %v4779_v51 = vld [vmem:[%s4985_s0 + $0xa0] sm:$0xff] }
 0x4ba   :  { %3909 = vtanh.f32 %v2476_v40  ;;  %2725 = vmatpush1.msra.mxu1 %v2583_v63  ;;  %2637 = vmatprep.subr.mxu0 %v2574_v49  ;;  %v2568_v38 = vadd.f32 0.5, %v2536_v24  ;;  %v2567_v37 = vadd.f32 0.5, %v4749_v56  ;;  %v2558_v52 = vadd.f32 0.5, %v4743_v31 }
 0x4bb   :  { %3911 = vtanh.f32 %v2475_v35  ;;  %2726 = vmatprep.subr.mxu1 %v2576_v41  ;;  %v4767_v36 = vpop.eup %3889  ;;  %2638 = vmatpush1.msra.mxu0 %v2573_v18  ;;  %v2560_v62 = vadd.f32 0.5, %v4745_v58  ;;  %v2557_v3 = vadd.f32 0.5, %v4732_v44  ;;  %v2559_v17 = vadd.f32 0.5, %v4734_v45  ;;  %v4790_v44 = vld [vmem:[%s4985_s0 + $0xa8] sm:$0xff]  ;;  %v4840_v18 = vld [vmem:[#allocation2 + $0xa0] sm:$0xff] }
 0x4bc   :  { %3913 = vtanh.f32 %v4752_v59  ;;  %2727 = vmatpush1.msra.mxu1 %v2575_v2  ;;  %2639 = vmatprep.subr.mxu0 %v2566_v15  ;;  %v2537_v29 = vmul.f32 0.5, %v4767_v36  ;;  %v2530_v54 = vmul.f32 0.5, %v4765_v57  ;;  %v4843_v36 = vld [vmem:[#allocation2 + $0xa8] sm:$0xff] }
 0x4bd   :  { %v3892_v39 = vpop.eup %3891  ;;  %3915 = vtanh.f32 %v2465_v46  ;;  %2728 = vmatprep.subr.mxu1 %v2568_v38  ;;  %2640 = vmatpush1.msra.mxu0 %v2565_v60 }
 0x4be   :  { %3917 = vtanh.f32 %v2467_v50  ;;  %2729 = vmatpush1.msra.mxu1 %v2567_v37  ;;  %2641 = vmatprep.subr.mxu0 %v2558_v52  ;;  %v2538_v26 = vmul.f32 0.5, %v3892_v39  ;;  %v2569_v1 = vadd.f32 0.5, %v2537_v29  ;;  %v2562_v24 = vadd.f32 0.5, %v2530_v54 }
 0x4bf   :  { %v3894_v20 = vpop.eup %3893  ;;  %2730 = vmatprep.subr.mxu1 %v2560_v62  ;;  %2642 = vmatpush1.msra.mxu0 %v2557_v3 }
 0x4c0   :  { %v3896_v56 = vpop.eup %3895  ;;  %2731 = vmatpush1.msra.mxu1 %v2559_v17  ;;  %3559 = vmatmul.mubr.msk.f32.vlgmr.msra.gmra.mxu0 %vm68_vm0, %v4779_v51  ;;  %v2545_v7 = vmul.f32 0.5, %v3894_v20  ;;  %v2570_v47 = vadd.f32 0.5, %v2538_v26 }
 0x4c1   :  { %v3898_v59 = vpop.eup %3897  ;;  %3563 = vmatmul.mubr.msk.f32.vlgmr.msra.gmra.mxu1 %vm68_vm0, %v4779_v51  ;;  %2681 = vmatprep.mubr.f32.mxu0 %v4008_v0  ;;  %v2547_v19 = vmul.f32 0.5, %v3896_v56 }
 0x4c2   :  { %v3900_v31 = vpop.eup %3899  ;;  %2770 = vmatprep.mubr.f32.mxu1 %v4008_v0  ;;  %v2546_v43 = vmul.f32 0.5, %v3898_v59  ;;  %v2577_v32 = vadd.f32 0.5, %v2545_v7 }
 0x4c3   :  { %v3902_v45 = vpop.eup %3901  ;;  %v2548_v16 = vmul.f32 0.5, %v3900_v31  ;;  %v2579_v34 = vadd.f32 0.5, %v2547_v19 }
 0x4c4   :  { %v3904_v58 = vpop.eup %3903  ;;  %v2553_v8 = vmul.f32 0.5, %v3902_v45  ;;  %3560 = vmatmul.mubr.msk.f32.gmra.mxu0 %vm68_vm0, %v4790_v44  ;;  %v2578_v25 = vadd.f32 0.5, %v2546_v43 }
 0x4c5   :  { %v3906_v4 = vpop.eup %3905  ;;  %3564 = vmatmul.mubr.msk.f32.gmra.mxu1 %vm68_vm0, %v4790_v44  ;;  %v2555_v10 = vmul.f32 0.5, %v3904_v58  ;;  %2687 = vmatprep.mubr.f32.mxu0 %v4008_v0  ;;  %v2580_v12 = vadd.f32 0.5, %v2548_v16 }
 0x4c6   :  { %v3908_v6 = vpop.eup %3907  ;;  %2776 = vmatprep.mubr.f32.mxu1 %v4008_v0  ;;  %v2554_v13 = vmul.f32 0.5, %v3906_v4  ;;  %v2585_v14 = vadd.f32 0.5, %v2553_v8 }
 0x4c7   :  { %v3910_v55 = vpop.eup %3909  ;;  %v2556_v5 = vmul.f32 0.5, %v3908_v6  ;;  %v2587_v42 = vadd.f32 0.5, %v2555_v10 }
 0x4c8   :  { %v3912_v33 = vpop.eup %3911  ;;  %v2586_v30 = vadd.f32 0.5, %v2554_v13  ;;  %3561 = vmatmul.mubr.msk.f32.gmra.mxu0 %vm68_vm0, %v4801_v28  ;;  %v2540_v9 = vmul.f32 0.5, %v3910_v55  ;;  %v4854_v55 = vld [vmem:[#allocation2 + $0xb8] sm:$0xff] }
 0x4c9   :  { %v3914_v53 = vpop.eup %3913  ;;  %3565 = vmatmul.mubr.msk.f32.gmra.mxu1 %vm68_vm0, %v4801_v28  ;;  %v2588_v21 = vadd.f32 0.5, %v2556_v5  ;;  %2693 = vmatprep.mubr.f32.mxu0 %v4008_v0  ;;  %v2539_v48 = vmul.f32 0.5, %v3912_v33 }
 0x4ca   :  { %v3916_v22 = vpop.eup %3915  ;;  %2813 = vmatprep.subr.mxu0 %v2586_v30  ;;  %v2532_v35 = vmul.f32 0.5, %v3914_v53  ;;  %2782 = vmatprep.mubr.f32.mxu1 %v4008_v0  ;;  %v2572_v23 = vadd.f32 0.5, %v2540_v9 }
 0x4cb   :  { %v3918_v11 = vpop.eup %3917  ;;  %2902 = vmatprep.subr.mxu1 %v2588_v21  ;;  %2814 = vmatpush1.msra.mxu0 %v2585_v14  ;;  %v2529_v40 = vmul.f32 0.5, %v3916_v22  ;;  %v2571_v63 = vadd.f32 0.5, %v2539_v48 }
 0x4cc   :  { %2903 = vmatpush1.msra.mxu1 %v2587_v42  ;;  %2815 = vmatprep.subr.mxu0 %v2578_v25  ;;  %v2531_v61 = vmul.f32 0.5, %v3918_v11  ;;  %v2564_v46 = vadd.f32 0.5, %v2532_v35 }
 0x4cd   :  { %2904 = vmatprep.subr.mxu1 %v2580_v12  ;;  %2816 = vmatpush1.msra.mxu0 %v2577_v32  ;;  %v2561_v49 = vadd.f32 0.5, %v2529_v40 }
 0x4ce   :  { %2905 = vmatpush1.msra.mxu1 %v2579_v34  ;;  %3562 = vmatmul.mubr.msk.f32.gmra.mxu0 %vm68_vm0, %v3558_v27  ;;  %v2563_v41 = vadd.f32 0.5, %v2531_v61 }
 0x4cf   :  { %3566 = vmatmul.mubr.msk.f32.gmra.mxu1 %vm68_vm0, %v3558_v27  ;;  %2817 = vmatprep.subr.mxu0 %v2570_v47 }
 0x4d0   :  { %2906 = vmatprep.subr.mxu1 %v2572_v23  ;;  %2818 = vmatpush1.msra.mxu0 %v2569_v1 }
 0x4d1   :  { %2907 = vmatpush1.msra.mxu1 %v2571_v63  ;;  %2819 = vmatprep.subr.mxu0 %v2562_v24 }
 0x4d2   :  { %2908 = vmatprep.subr.mxu1 %v2564_v46  ;;  %2820 = vmatpush1.msra.mxu0 %v2561_v49 }
 0x4d3   :  { %2853 = vmatprep.mubr.f32.mxu0 %v4008_v0  ;;  %2909 = vmatpush1.msra.mxu1 %v2563_v41 }
 0x4d4   :  { %2942 = vmatprep.mubr.f32.mxu1 %v4008_v0  ;;  %3567 = vmatmul.mubr.msk.f32.vlgmr.msra.gmra.mxu0 %vm68_vm0, %v4779_v51 }
 0x4d5   :  { %3571 = vmatmul.mubr.msk.f32.vlgmr.msra.gmra.mxu1 %vm68_vm0, %v4779_v51  ;;  %2859 = vmatprep.mubr.f32.mxu0 %v4008_v0  ;;  %v4848_v51 = vld [vmem:[#allocation2 + $0xb0] sm:$0xff] }
 0x4d6   :  { %2948 = vmatprep.mubr.f32.mxu1 %v4008_v0 }
 0x4d8   :  { %3568 = vmatmul.mubr.msk.f32.gmra.mxu0 %vm68_vm0, %v4790_v44 }
 0x4d9   :  { %3572 = vmatmul.mubr.msk.f32.gmra.mxu1 %vm68_vm0, %v4790_v44  ;;  %2865 = vmatprep.mubr.f32.mxu0 %v4008_v0 }
 0x4da   :  { %2954 = vmatprep.mubr.f32.mxu1 %v4008_v0 }
 0x4dc   :  { %3569 = vmatmul.mubr.msk.f32.gmra.mxu0 %vm68_vm0, %v4801_v28 }
 0x4dd   :  { %3573 = vmatmul.mubr.msk.f32.gmra.mxu1 %vm68_vm0, %v4801_v28  ;;  %2871 = vmatprep.mubr.f32.mxu0 %v4008_v0 }
 0x4de   :  { %2960 = vmatprep.mubr.f32.mxu1 %v4008_v0 }
 0x4e0   :  { %3570 = vmatmul.mubr.msk.f32.gmra.mxu0 %vm68_vm0, %v3558_v27 }
 0x4e1   :  { %3574 = vmatmul.mubr.msk.f32.gmra.mxu1 %vm68_vm0, %v3558_v27  ;;  %3178 = vmatprep.mubr.f32.mxu0 %v4008_v0 }
 0x4e2   :  { %3261 = vmatprep.mubr.f32.mxu1 %v4008_v0 }
 0x580   :  { %v2677_v2 = vpop.f32.mrf.mxu0 }
 0x581   :  { %v2766_v50 = vpop.f32.mrf.mxu1  ;;  %v2678_v57 = vadd.f32 %v2677_v2, %v4840_v18 }
 0x582   :  { %v2679_v15 = vpop.f32.mrf.mxu0  ;;  %v2767_v29 = vadd.f32 %v2766_v50, %v4840_v18 }
 0x583   :  { %v2768_v38 = vpop.f32.mrf.mxu1  ;;  %v2680_v60 = vadd.f32 %v2679_v15, %v4840_v18  ;;  %v2967_v62 = vmul.f32 0.5, %v2678_v57 }
 0x584   :  { %v2683_v37 = vpop.f32.mrf.mxu0  ;;  %v2769_v14 = vadd.f32 %v2768_v38, %v4840_v18  ;;  %v2969_v61 = vmul.f32 0.5, %v2767_v29 }
 0x585   :  { %v2772_v39 = vpop.f32.mrf.mxu1  ;;  %v2684_v52 = vadd.f32 %v2683_v37, %v4843_v36  ;;  %v2968_v56 = vmul.f32 0.5, %v2680_v60  ;;  %3919 = vtanh.f32 %v2967_v62 }
 0x586   :  { %v2773_v20 = vadd.f32 %v2772_v39, %v4843_v36  ;;  %v2685_v3 = vpop.f32.mrf.mxu0  ;;  %v2970_v35 = vmul.f32 0.5, %v2769_v14 }
 0x587   :  { %v2774_v17 = vpop.f32.mrf.mxu1  ;;  %v2975_v59 = vmul.f32 0.5, %v2684_v52  ;;  %3921 = vtanh.f32 %v2968_v56  ;;  %v2686_v19 = vadd.f32 %v2685_v3, %v4843_v36 }
 0x588   :  { %v2689_v31 = vpop.f32.mrf.mxu0  ;;  %v2977_v45 = vmul.f32 0.5, %v2773_v20  ;;  %v2775_v21 = vadd.f32 %v2774_v17, %v4843_v36 }
 0x589   :  { %v2778_v44 = vpop.f32.mrf.mxu1  ;;  %v2690_v58 = vadd.f32 %v2689_v31, %v4848_v51  ;;  %3923 = vtanh.f32 %v2975_v59  ;;  %v2976_v48 = vmul.f32 0.5, %v2686_v19 }
 0x58a   :  { %v2779_v4 = vadd.f32 %v2778_v44, %v4848_v51  ;;  %v2691_v8 = vpop.f32.mrf.mxu0  ;;  %3925 = vtanh.f32 %v2977_v45  ;;  %v2978_v34 = vmul.f32 0.5, %v2775_v21 }
 0x58b   :  { %v2780_v6 = vpop.f32.mrf.mxu1  ;;  %v2983_v10 = vmul.f32 0.5, %v2690_v58  ;;  %v2692_v28 = vadd.f32 %v2691_v8, %v4848_v51 }
 0x58c   :  { %v2781_v13 = vadd.f32 %v2780_v6, %v4848_v51  ;;  %v2985_v43 = vmul.f32 0.5, %v2779_v4 }
 0x58d   :  { %v2984_v5 = vmul.f32 0.5, %v2692_v28  ;;  %3927 = vtanh.f32 %v2983_v10 }
 0x58e   :  { %v2986_v16 = vmul.f32 0.5, %v2781_v13  ;;  %v2695_v33 = vpop.f32.mrf.mxu0  ;;  %3929 = vtanh.f32 %v2985_v43 }
 0x58f   :  { %v2784_v7 = vpop.f32.mrf.mxu1  ;;  %v2696_v30 = vadd.f32 %v2695_v33, %v4854_v55  ;;  %3931 = vtanh.f32 %v2984_v5 }
 0x590   :  { %v2785_v53 = vadd.f32 %v2784_v7, %v4854_v55  ;;  %v2697_v22 = vpop.f32.mrf.mxu0  ;;  %3933 = vtanh.f32 %v2986_v16 }
 0x591   :  { %v2786_v42 = vpop.f32.mrf.mxu1  ;;  %v2991_v25 = vmul.f32 0.5, %v2696_v30  ;;  %v2698_v9 = vadd.f32 %v2697_v22, %v4854_v55 }
 0x592   :  { %v2993_v26 = vmul.f32 0.5, %v2785_v53  ;;  %v2787_v11 = vadd.f32 %v2786_v42, %v4854_v55  ;;  %v3920_v1 = vpop.eup %3919 }
 0x593   :  { %3935 = vtanh.f32 %v2991_v25  ;;  %v2992_v12 = vmul.f32 0.5, %v2698_v9  ;;  %v4868_v52 = vmul.f32 0.5, %v3920_v1 }
 0x594   :  { %v2994_v32 = vmul.f32 0.5, %v2787_v11  ;;  %3937 = vtanh.f32 %v2993_v26  ;;  %v2855_v27 = vpop.f32.mrf.mxu0  ;;  %v3922_v24 = vpop.eup %3921 }
 0x595   :  { %v2944_v54 = vpop.f32.mrf.mxu1  ;;  %3939 = vtanh.f32 %v2992_v12  ;;  %v2856_v40 = vadd.f32 %v2855_v27, %v4840_v18  ;;  %v4871_v3 = vmul.f32 0.5, %v3922_v24 }
 0x596   :  { %3941 = vtanh.f32 %v2994_v32  ;;  %v2857_v47 = vpop.f32.mrf.mxu0  ;;  %v3924_v2 = vpop.eup %3923  ;;  %v2945_v50 = vadd.f32 %v2944_v54, %v4840_v18 }
 0x597   :  { %v2946_v23 = vpop.f32.mrf.mxu1  ;;  %3943 = vtanh.f32 %v2976_v48  ;;  %v2858_v63 = vadd.f32 %v2857_v47, %v4840_v18  ;;  %v2971_v46 = vmul.f32 0.5, %v2856_v40  ;;  %v3926_v38 = vpop.eup %3925  ;;  %v4873_v56 = vmul.f32 0.5, %v3924_v2 }
 0x598   :  { %3945 = vtanh.f32 %v2978_v34  ;;  %v2861_v49 = vpop.f32.mrf.mxu0  ;;  %v2947_v59 = vadd.f32 %v2946_v23, %v4840_v18  ;;  %v4877_v4 = vmul.f32 0.5, %v2945_v50  ;;  %v4880_v10 = vmul.f32 0.5, %v3926_v38 }
 0x599   :  { %v2950_v41 = vpop.f32.mrf.mxu1  ;;  %3947 = vtanh.f32 %v2970_v35  ;;  %v2972_v57 = vmul.f32 0.5, %v2858_v63  ;;  %v2862_v15 = vadd.f32 %v2861_v49, %v4843_v36 }
 0x59a   :  { %3949 = vtanh.f32 %v2969_v61  ;;  %v2863_v60 = vpop.f32.mrf.mxu0  ;;  %v3928_v39 = vpop.eup %3927  ;;  %v2974_v30 = vmul.f32 0.5, %v2947_v59  ;;  %v2951_v53 = vadd.f32 %v2950_v41, %v4843_v36 }
 0x59b   :  { %v2952_v37 = vpop.f32.mrf.mxu1  ;;  %v2979_v62 = vmul.f32 0.5, %v2862_v15  ;;  %v2864_v20 = vadd.f32 %v2863_v60, %v4843_v36  ;;  %v3930_v17 = vpop.eup %3929  ;;  %3951 = vtanh.f32 %v2971_v46  ;;  %v3047_v41 = vmul.f32 0.5, %v3928_v39 }
 0x59c   :  { %v2953_v31 = vadd.f32 %v2952_v37, %v4843_v36  ;;  %v2867_v44 = vpop.f32.mrf.mxu0  ;;  %v3932_v58 = vpop.eup %3931  ;;  %3953 = vtanh.f32 %v2972_v57  ;;  %v3049_v2 = vmul.f32 0.5, %v3930_v17  ;;  %v2981_v50 = vmul.f32 0.5, %v2951_v53 }
 0x59d   :  { %v2956_v45 = vpop.f32.mrf.mxu1  ;;  %v2980_v8 = vmul.f32 0.5, %v2864_v20  ;;  %v2868_v6 = vadd.f32 %v2867_v44, %v4848_v51  ;;  %3955 = vtanh.f32 %v2979_v62  ;;  %v3934_v18 = vpop.eup %3933  ;;  %v3048_v9 = vmul.f32 0.5, %v3932_v58 }
 0x59e   :  { %v2982_v28 = vmul.f32 0.5, %v2953_v31  ;;  %v2957_v13 = vadd.f32 %v2956_v45, %v4848_v51  ;;  %v2869_v43 = vpop.f32.mrf.mxu0  ;;  %v3050_v32 = vmul.f32 0.5, %v3934_v18  ;;  %v3079_v45 = vadd.f32 0.5, %v3047_v41 }
 0x59f   :  { %v2958_v5 = vpop.f32.mrf.mxu1  ;;  %3957 = vtanh.f32 %v2980_v8  ;;  %v2987_v16 = vmul.f32 0.5, %v2868_v6  ;;  %v2870_v33 = vadd.f32 %v2869_v43, %v4848_v51  ;;  %v3080_v59 = vadd.f32 0.5, %v3048_v9 }
 0x5a0   :  { %v2959_v7 = vadd.f32 %v2958_v5, %v4848_v51  ;;  %v3936_v19 = vpop.eup %3935  ;;  %3959 = vtanh.f32 %v2982_v28  ;;  %v2989_v14 = vmul.f32 0.5, %v2957_v13  ;;  %v2873_v21 = vpop.f32.mrf.mxu0  ;;  %v3082_v31 = vadd.f32 0.5, %v3050_v32 }
 0x5a1   :  { %v2962_v22 = vpop.f32.mrf.mxu1  ;;  %v3938_v42 = vpop.eup %3937  ;;  %3961 = vtanh.f32 %v2987_v16  ;;  %v2988_v25 = vmul.f32 0.5, %v2870_v33  ;;  %v2874_v29 = vadd.f32 %v2873_v21, %v4854_v55  ;;  %v3055_v36 = vmul.f32 0.5, %v3936_v19 }
 0x5a2   :  { %v2990_v26 = vmul.f32 0.5, %v2959_v7  ;;  %v3940_v11 = vpop.eup %3939  ;;  %3963 = vtanh.f32 %v2989_v14  ;;  %v2963_v48 = vadd.f32 %v2962_v22, %v4854_v55  ;;  %v2875_v51 = vpop.f32.mrf.mxu0  ;;  %v3057_v40 = vmul.f32 0.5, %v3938_v42 }
 0x5a3   :  { %v2964_v12 = vpop.f32.mrf.mxu1  ;;  %v3942_v34 = vpop.eup %3941  ;;  %3965 = vtanh.f32 %v2988_v25  ;;  %v2876_v27 = vadd.f32 %v2875_v51, %v4854_v55  ;;  %v2995_v61 = vmul.f32 0.5, %v2874_v29  ;;  %v3056_v24 = vmul.f32 0.5, %v3940_v11  ;;  %v4924_v11 = vld [vmem:[%s4985_s0 + $0xd0] sm:$0xff] }
 0x5a4   :  { %v2965_v54 = vadd.f32 %v2964_v12, %v4854_v55  ;;  %v3944_v35 = vpop.eup %3943  ;;  %3967 = vtanh.f32 %v2990_v26  ;;  %v2997_v47 = vmul.f32 0.5, %v2963_v48  ;;  %v3058_v46 = vmul.f32 0.5, %v3942_v34 }
 0x5a5   :  { %v3946_v23 = vpop.eup %3945  ;;  %v2996_v1 = vmul.f32 0.5, %v2876_v27  ;;  %3969 = vtanh.f32 %v2995_v61  ;;  %v3088_v15 = vadd.f32 0.5, %v3056_v24  ;;  %v3040_v55 = vmul.f32 0.5, %v3944_v35 }
 0x5a6   :  { %v2998_v63 = vmul.f32 0.5, %v2965_v54  ;;  %v3948_v49 = vpop.eup %3947  ;;  %3971 = vtanh.f32 %v2997_v47  ;;  %v3090_v38 = vadd.f32 0.5, %v3058_v46  ;;  %v3087_v60 = vadd.f32 0.5, %v3055_v36 }
 0x5a7   :  { %v3950_v57 = vpop.eup %3949  ;;  %v3089_v37 = vadd.f32 0.5, %v3057_v40  ;;  %3973 = vtanh.f32 %v2996_v1  ;;  %v3042_v62 = vmul.f32 0.5, %v3946_v23  ;;  %3138 = vmatprep.subr.mxu0 %v3088_v15  ;;  %v3034_v39 = vmul.f32 0.5, %v3948_v49 }
 0x5a8   :  { %v4890_v20 = vpop.eup %3951  ;;  %3975 = vtanh.f32 %v2998_v63  ;;  %3221 = vmatprep.subr.mxu1 %v3090_v38  ;;  %v3033_v44 = vmul.f32 0.5, %v3950_v57  ;;  %v3081_v58 = vadd.f32 0.5, %v3049_v2  ;;  %3139 = vmatpush1.msra.mxu0 %v3087_v60  ;;  %v3072_v6 = vadd.f32 0.5, %v3040_v55 }
 0x5a9   :  { %v4892_v17 = vpop.eup %3953  ;;  %3977 = vtanh.f32 %v2981_v50  ;;  %3222 = vmatpush1.msra.mxu1 %v3089_v37  ;;  %3140 = vmatprep.subr.mxu0 %v3080_v59  ;;  %v3074_v28 = vadd.f32 0.5, %v3042_v62  ;;  %v3071_v43 = vadd.f32 0.5, %v4873_v56  ;;  %v3073_v5 = vadd.f32 0.5, %v4880_v10  ;;  %v4902_v56 = vld [vmem:[%s4985_s0 + $0xc0] sm:$0xff] }
 0x5aa   :  { %v3956_v8 = vpop.eup %3955  ;;  %3979 = vtanh.f32 %v2974_v30  ;;  %3223 = vmatprep.subr.mxu1 %v3082_v31  ;;  %3141 = vmatpush1.msra.mxu0 %v3079_v45  ;;  %v3064_v16 = vadd.f32 0.5, %v4871_v3  ;;  %v3066_v33 = vadd.f32 0.5, %v3034_v39  ;;  %v3063_v19 = vadd.f32 0.5, %v4868_v52  ;;  %v4913_v52 = vld [vmem:[%s4985_s0 + $0xc8] sm:$0xff]  ;;  %v3578_v31 = vld [vmem:[%s4985_s0 + $0xd8] sm:$0xff]  ;;  %v3101_v39 = vld [vmem:[#allocation2 + $0xc0] sm:$0xff] }
 0x5ab   :  { %3981 = vtanh.f32 %v4877_v4  ;;  %3224 = vmatpush1.msra.mxu1 %v3081_v58  ;;  %3142 = vmatprep.subr.mxu0 %v3072_v6  ;;  %v3065_v30 = vadd.f32 0.5, %v3033_v44  ;;  %v3043_v35 = vmul.f32 0.5, %v3956_v8  ;;  %v3036_v24 = vmul.f32 0.5, %v4892_v17 }
 0x5ac   :  { %v3958_v13 = vpop.eup %3957  ;;  %3225 = vmatprep.subr.mxu1 %v3074_v28  ;;  %3143 = vmatpush1.msra.mxu0 %v3071_v43  ;;  %v3035_v46 = vmul.f32 0.5, %v4890_v20 }
 0x5ad   :  { %v3960_v18 = vpop.eup %3959  ;;  %3226 = vmatpush1.msra.mxu1 %v3073_v5  ;;  %3144 = vmatprep.subr.mxu0 %v3064_v16  ;;  %v3044_v27 = vmul.f32 0.5, %v3958_v13  ;;  %v3075_v38 = vadd.f32 0.5, %v3043_v35  ;;  %v3068_v37 = vadd.f32 0.5, %v3036_v24 }
 0x5ae   :  { %v3962_v7 = vpop.eup %3961  ;;  %3227 = vmatprep.subr.mxu1 %v3066_v33  ;;  %3145 = vmatpush1.msra.mxu0 %v3063_v19  ;;  %v3046_v47 = vmul.f32 0.5, %v3960_v18  ;;  %v3067_v62 = vadd.f32 0.5, %v3035_v46 }
 0x5af   :  { %v3964_v4 = vpop.eup %3963  ;;  %3228 = vmatpush1.msra.mxu1 %v3065_v30  ;;  %3579 = vmatmul.mubr.msk.f32.vlgmr.msra.gmra.mxu0 %vm68_vm0, %v4902_v56  ;;  %v3051_v48 = vmul.f32 0.5, %v3962_v7  ;;  %v3076_v15 = vadd.f32 0.5, %v3044_v27 }
 0x5b0   :  { %v3966_v10 = vpop.eup %3965  ;;  %3583 = vmatmul.mubr.msk.f32.vlgmr.msra.gmra.mxu1 %vm68_vm0, %v4902_v56  ;;  %3184 = vmatprep.mubr.f32.mxu0 %v4008_v0  ;;  %v3053_v34 = vmul.f32 0.5, %v3964_v4  ;;  %v3078_v55 = vadd.f32 0.5, %v3046_v47 }
 0x5b1   :  { %v3968_v53 = vpop.eup %3967  ;;  %3267 = vmatprep.mubr.f32.mxu1 %v4008_v0  ;;  %v3052_v9 = vmul.f32 0.5, %v3966_v10  ;;  %v3083_v49 = vadd.f32 0.5, %v3051_v48 }
 0x5b2   :  { %v3970_v3 = vpop.eup %3969  ;;  %v3054_v12 = vmul.f32 0.5, %v3968_v53  ;;  %v3085_v57 = vadd.f32 0.5, %v3053_v34 }
 0x5b3   :  { %v3972_v14 = vpop.eup %3971  ;;  %v3059_v22 = vmul.f32 0.5, %v3970_v3  ;;  %3580 = vmatmul.mubr.msk.f32.gmra.mxu0 %vm68_vm0, %v4913_v52  ;;  %v3084_v63 = vadd.f32 0.5, %v3052_v9 }
 0x5b4   :  { %v3974_v21 = vpop.eup %3973  ;;  %3584 = vmatmul.mubr.msk.f32.gmra.mxu1 %vm68_vm0, %v4913_v52  ;;  %v3061_v25 = vmul.f32 0.5, %v3972_v14  ;;  %3188 = vmatprep.mubr.f32.mxu0 %v4008_v0  ;;  %v3086_v41 = vadd.f32 0.5, %v3054_v12 }
 0x5b5   :  { %v3976_v42 = vpop.eup %3975  ;;  %v3060_v26 = vmul.f32 0.5, %v3974_v21  ;;  %3271 = vmatprep.mubr.f32.mxu1 %v4008_v0  ;;  %v3091_v40 = vadd.f32 0.5, %v3059_v22 }
 0x5b6   :  { %v3978_v29 = vpop.eup %3977  ;;  %v3062_v51 = vmul.f32 0.5, %v3976_v42  ;;  %v3093_v1 = vadd.f32 0.5, %v3061_v25 }
 0x5b7   :  { %v3980_v32 = vpop.eup %3979  ;;  %v3092_v36 = vadd.f32 0.5, %v3060_v26  ;;  %3581 = vmatmul.mubr.msk.f32.gmra.mxu0 %vm68_vm0, %v4924_v11  ;;  %v3045_v23 = vmul.f32 0.5, %v3978_v29 }
 0x5b8   :  { %v3982_v54 = vpop.eup %3981  ;;  %v3094_v61 = vadd.f32 0.5, %v3062_v51  ;;  %3585 = vmatmul.mubr.msk.f32.gmra.mxu1 %vm68_vm0, %v4924_v11  ;;  %3192 = vmatprep.mubr.f32.mxu0 %v4008_v0  ;;  %v3038_v2 = vmul.f32 0.5, %v3980_v32 }
 0x5b9   :  { %3304 = vmatprep.subr.mxu0 %v3092_v36  ;;  %v3037_v50 = vmul.f32 0.5, %v3982_v54  ;;  %v3077_v60 = vadd.f32 0.5, %v3045_v23  ;;  %3275 = vmatprep.mubr.f32.mxu1 %v4008_v0 }
 0x5ba   :  { %3387 = vmatprep.subr.mxu1 %v3094_v61  ;;  %3305 = vmatpush1.msra.mxu0 %v3091_v40  ;;  %v3070_v20 = vadd.f32 0.5, %v3038_v2 }
 0x5bb   :  { %3388 = vmatpush1.msra.mxu1 %v3093_v1  ;;  %3306 = vmatprep.subr.mxu0 %v3084_v63  ;;  %v3069_v59 = vadd.f32 0.5, %v3037_v50 }
 0x5bc   :  { %3389 = vmatprep.subr.mxu1 %v3086_v41  ;;  %3307 = vmatpush1.msra.mxu0 %v3083_v49 }
 0x5bd   :  { %3390 = vmatpush1.msra.mxu1 %v3085_v57  ;;  %3308 = vmatprep.subr.mxu0 %v3076_v15 }
 0x5be   :  { %3391 = vmatprep.subr.mxu1 %v3078_v55  ;;  %3309 = vmatpush1.msra.mxu0 %v3075_v38 }
 0x5bf   :  { %3392 = vmatpush1.msra.mxu1 %v3077_v60  ;;  %3310 = vmatprep.subr.mxu0 %v3068_v37 }
 0x5c0   :  { %3393 = vmatprep.subr.mxu1 %v3070_v20  ;;  %3311 = vmatpush1.msra.mxu0 %v3067_v62 }
 0x5c1   :  { %3394 = vmatpush1.msra.mxu1 %v3069_v59  ;;  %3582 = vmatmul.mubr.msk.f32.gmra.mxu0 %vm68_vm0, %v3578_v31 }
 0x5c2   :  { %3586 = vmatmul.mubr.msk.f32.gmra.mxu1 %vm68_vm0, %v3578_v31  ;;  %3344 = vmatprep.mubr.f32.mxu0 %v4008_v0 }
 0x5c3   :  { %3427 = vmatprep.mubr.f32.mxu1 %v4008_v0 }
 0x5c5   :  { %3587 = vmatmul.mubr.msk.f32.vlgmr.msra.gmra.mxu0 %vm68_vm0, %v4902_v56 }
 0x5c6   :  { %3591 = vmatmul.mubr.msk.f32.vlgmr.msra.gmra.mxu1 %vm68_vm0, %v4902_v56  ;;  %3350 = vmatprep.mubr.f32.mxu0 %v4008_v0 }
 0x5c7   :  { %3433 = vmatprep.mubr.f32.mxu1 %v4008_v0 }
 0x5c9   :  { %3588 = vmatmul.mubr.msk.f32.gmra.mxu0 %vm68_vm0, %v4913_v52 }
 0x5ca   :  { %3592 = vmatmul.mubr.msk.f32.gmra.mxu1 %vm68_vm0, %v4913_v52  ;;  %3354 = vmatprep.mubr.f32.mxu0 %v4008_v0 }
 0x5cb   :  { %3437 = vmatprep.mubr.f32.mxu1 %v4008_v0 }
 0x5cd   :  { %3589 = vmatmul.mubr.msk.f32.gmra.mxu0 %vm68_vm0, %v4924_v11 }
 0x5ce   :  { %3593 = vmatmul.mubr.msk.f32.gmra.mxu1 %vm68_vm0, %v4924_v11  ;;  %3358 = vmatprep.mubr.f32.mxu0 %v4008_v0 }
 0x5cf   :  { %3441 = vmatprep.mubr.f32.mxu1 %v4008_v0 }
 0x5d1   :  { %3590 = vmatmul.mubr.msk.f32.gmra.mxu0 %vm68_vm0, %v3578_v31 }
 0x5d2   :  { %3594 = vmatmul.mubr.msk.f32.gmra.mxu1 %vm68_vm0, %v3578_v31 }
 0x66f   :  { %v3180_v17 = vpop.f32.mrf.mxu0 }
 0x670   :  { %v3263_v44 = vpop.f32.mrf.mxu1  ;;  %v3181_v45 = vadd.f32 %v3180_v17, %v3101_v39 }
 0x671   :  { %v3264_v58 = vadd.f32 %v3263_v44, %v3101_v39  ;;  %v3182_v8 = vpop.f32.mrf.mxu0 }
 0x672   :  { %v3265_v6 = vpop.f32.mrf.mxu1  ;;  %3446 = vst [vmem:[%s4988_s3] sm:$0xff] %v3181_v45  ;;  %v3183_v0 = vadd.f32 %v3182_v8, %v3101_v39 }
 0x673   :  { %3448 = vst [vmem:[%s4988_s3 + $0x10] sm:$0xff] %v3264_v58  ;;  %v3266_v28 = vadd.f32 %v3265_v6, %v3101_v39  ;;  %v3186_v13 = vpop.f32.mrf.mxu0 }
 0x674   :  { %v3269_v43 = vpop.f32.mrf.mxu1  ;;  %3447 = vst [vmem:[%s4988_s3 + $0x8] sm:$0xff] %v3183_v0 }
 0x675   :  { %3449 = vst [vmem:[%s4988_s3 + $0x18] sm:$0xff] %v3266_v28  ;;  %v3187_v5 = vpop.f32.mrf.mxu0 }
 0x676   :  { %v3270_v18 = vpop.f32.mrf.mxu1 }
 0x677   :  { %v3190_v16 = vpop.f32.mrf.mxu0 }
 0x678   :  { %v3273_v33 = vpop.f32.mrf.mxu1 }
 0x679   :  { %v3191_v7 = vpop.f32.mrf.mxu0 }
 0x67a   :  { %v3274_v19 = vpop.f32.mrf.mxu1 }
 0x681   :  { %v3194_v30 = vpop.f32.mrf.mxu0 }
 0x682   :  { %v3277_v56 = vpop.f32.mrf.mxu1 }
 0x683   :  { %v3195_v4 = vpop.f32.mrf.mxu0 }
 0x684   :  { %v3278_v10 = vpop.f32.mrf.mxu1 }
 0x685   :  { %v3346_v53 = vpop.f32.mrf.mxu0 }
 0x686   :  { %v3429_v52 = vpop.f32.mrf.mxu1  ;;  %v3347_v3 = vadd.f32 %v3346_v53, %v3101_v39 }
 0x687   :  { %v3430_v14 = vadd.f32 %v3429_v52, %v3101_v39  ;;  %v3348_v21 = vpop.f32.mrf.mxu0 }
 0x688   :  { %v3431_v22 = vpop.f32.mrf.mxu1  ;;  %3450 = vst [vmem:[%s4988_s3 + $0x20] sm:$0xff] %v3347_v3  ;;  %v3349_v42 = vadd.f32 %v3348_v21, %v3101_v39 }
 0x689   :  { %3452 = vst [vmem:[%s4988_s3 + $0x30] sm:$0xff] %v3430_v14  ;;  %v3432_v25 = vadd.f32 %v3431_v22, %v3101_v39  ;;  %v3352_v26 = vpop.f32.mrf.mxu0 }
 0x68a   :  { %v3435_v9 = vpop.f32.mrf.mxu1  ;;  %3451 = vst [vmem:[%s4988_s3 + $0x28] sm:$0xff] %v3349_v42 }
 0x68b   :  { %3453 = vst [vmem:[%s4988_s3 + $0x38] sm:$0xff] %v3432_v25  ;;  %v3353_v11 = vpop.f32.mrf.mxu0 }
 0x68c   :  { %v3436_v29 = vpop.f32.mrf.mxu1 }
 0x68d   :  { %v3356_v48 = vpop.f32.mrf.mxu0 }
 0x68e   :  { %v3439_v51 = vpop.f32.mrf.mxu1 }
 0x68f   :  { %v3357_v12 = vpop.f32.mrf.mxu0 }
 0x690   :  { %v3440_v32 = vpop.f32.mrf.mxu1 }
 0x691   :  { %v3360_v34 = vpop.f32.mrf.mxu0 }
 0x692   :  { %v3443_v36 = vpop.f32.mrf.mxu1 }
 0x693   :  { %v3361_v27 = vpop.f32.mrf.mxu0 }
 0x694   :  { %v3444_v54 = vpop.f32.mrf.mxu1 }
 0x695   :  { %3458 = vsyncpa [#allocation3], 1 }

</bundles_post_ra>
